<compile_context>
chip_gen: v5e
topology: v5e:2x2
jax: 0.10.0
libtpu: 0.0.40
codegen_flags: <defaults>
</compile_context>

<pallas_src>
import functools

import jax
import jax.numpy as jnp
from jax.experimental import pallas as pl
from jax.experimental.pallas import tpu as pltpu


def attention_kernel(x_ref, wqkv_ref, wproj_ref, bproj_ref, o_ref, *, num_heads, scale):
    """One batch tile (TB sequences) per grid step.

    x_ref:     (TB, N, C)  activations (bf16 recommended)
    wqkv_ref:  (C, 3C)     qkv weight, pre-transposed (= nn.Linear(dim, 3*dim).weight.T)
    wproj_ref: (C, C)      proj weight, pre-transposed
    bproj_ref: (1, C)      proj bias (f32)
    o_ref:     (TB, N, C)
    """
    TB, N, C = x_ref.shape
    hd = C // num_heads

    # Collapse batch-tile rows (leading dims only: lanes untouched, no relayout).
    x = x_ref[...].reshape(TB * N, C)

    # QKV projection for all TB*N rows at once: one big MXU matmul, f32 accumulation.
    qkv = jnp.dot(x, wqkv_ref[...], preferred_element_type=jnp.float32)      # (TB*N, 3C)

    # Per-(sequence, head) attention.  Heads stay on the lane axis: every q/k/v slice
    # below is a static, lane-aligned slice of qkv -- no (H, N, hd) reshape/transpose.
    rows = []
    for b in range(TB):
        r0 = b * N
        head_outs = []
        for h in range(num_heads):
            c0 = h * hd
            # scale folded into q (O(N*hd)) instead of the (N, N) scores.
            q = qkv[r0:r0 + N, c0:c0 + hd] * scale                            # (N, hd) f32
            k = qkv[r0:r0 + N, C + c0:C + c0 + hd]                            # (N, hd) f32
            v = qkv[r0:r0 + N, 2 * C + c0:2 * C + c0 + hd]                    # (N, hd) f32

            s = jnp.einsum("nd,md->nm", q, k,
                           preferred_element_type=jnp.float32)                # (N, N)
            s = s - jnp.max(s, axis=-1, keepdims=True)
            p = jnp.exp(s)
            denom = jnp.sum(p, axis=-1, keepdims=True)                        # (N, 1)
            pv = jnp.dot(p, v, preferred_element_type=jnp.float32)            # (N, hd)
            # 1/denom folded into the small (N, hd) output, EUP reciprocal.
            head_outs.append(pv * pl.reciprocal(denom, approx=True))
        rows.append(jnp.concatenate(head_outs, axis=-1))                      # (N, C)
    merged = jnp.concatenate(rows, axis=0)                                    # (TB*N, C)

    out = jnp.dot(merged.astype(wproj_ref.dtype), wproj_ref[...],
                  preferred_element_type=jnp.float32) + bproj_ref[...]
    o_ref[...] = out.reshape(TB, N, C).astype(o_ref.dtype)


def _pick_batch_tile(B, N, target_rows=128, min_steps=4):
    """Largest divisor of B with TB*N <= target_rows, preferring >= min_steps grid steps."""
    cap = max(1, target_rows // max(N, 1))
    divisors = [tb for tb in range(1, B + 1) if B % tb == 0 and tb <= cap]
    for steps in (min_steps, 2, 1):
        ok = [tb for tb in divisors if B // tb >= steps]
        if ok:
            return max(ok)
    return 1


def _vmem_limit_bytes():
    """Generation-aware VMEM limit: ~75% of physical capacity (v7x has only 64 MiB/TC)."""
    default = 64 * 1024 * 1024
    try:
        cap = int(getattr(pltpu.get_tpu_info(), "vmem_capacity_bytes", default))
    except Exception:
        cap = default
    return cap * 3 // 4


def attention_forward(x, params, num_heads):
    B, N, C = x.shape
    assert C % num_heads == 0
    hd = C // num_heads
    scale = float(hd) ** -0.5

    tb = _pick_batch_tile(B, N)
    grid = (B // tb,)

    kernel = functools.partial(attention_kernel, num_heads=num_heads, scale=scale)

    # Weights never change across the batch grid: whole-array VMEM residents
    # (single buffer, loaded once) rather than double-buffered blocked inputs.
    weight_spec = pl.BlockSpec(memory_space=pltpu.MemorySpace.VMEM)

    itemsize = lambda a: a.size * a.dtype.itemsize
    flops = (2 * B * N * C * 3 * C                       # qkv projection
             + 2 * 2 * B * num_heads * N * N * hd        # scores + PV
             + 2 * B * N * C * C)                        # output projection
    cost = pl.CostEstimate(
        flops=flops,
        transcendentals=B * num_heads * N * (N + 1),     # exp + reciprocal
        bytes_accessed=(itemsize(x) + itemsize(params["wqkv_t"]) +
                        itemsize(params["wproj_t"]) + itemsize(params["bproj"]) +
                        itemsize(x)),                    # output same size/dtype as x
    )

    return pl.pallas_call(
        kernel,
        out_shape=jax.ShapeDtypeStruct((B, N, C), x.dtype),
        grid=grid,
        in_specs=[
            pl.BlockSpec((tb, N, C), lambda i: (i, 0, 0)),   # x: TB sequences per step
            weight_spec,                                     # wqkv_t  (C, 3C)
            weight_spec,                                     # wproj_t (C, C)
            weight_spec,                                     # bproj   (1, C)
        ],
        out_specs=pl.BlockSpec((tb, N, C), lambda i: (i, 0, 0)),
        compiler_params=pltpu.CompilerParams(
            dimension_semantics=("parallel",),               # batch tiles shard across TCs
            vmem_limit_bytes=_vmem_limit_bytes(),
        ),
        cost_estimate=cost,
    )(x, params["wqkv_t"], params["wproj_t"], params["bproj"])


def reference_attention(x, params, num_heads):
    """Pure-JAX f32 reference matching the PyTorch forward (comb=False, dropout=identity)."""
    B, N, C = x.shape
    hd = C // num_heads
    scale = hd ** -0.5
    xf = x.astype(jnp.float32)
    wqkv = params["wqkv_t"].astype(jnp.float32)
    wproj = params["wproj_t"].astype(jnp.float32)
    qkv = xf @ wqkv                                           # == x @ W_qkv.T in PyTorch
    qkv = qkv.reshape(B, N, 3, num_heads, hd).transpose(2, 0, 3, 1, 4)
    q, k, v = qkv[0], qkv[1], qkv[2]                          # (B, H, N, hd)
    attn = jnp.einsum("bhnd,bhmd->bhnm", q, k) * scale
    attn = jax.nn.softmax(attn, axis=-1)
    o = jnp.einsum("bhnm,bhmd->bhnd", attn, v)
    o = o.transpose(0, 2, 1, 3).reshape(B, N, C)
    return o @ wproj + params["bproj"]


def make_params(key, dim, dtype=jnp.bfloat16):
    """Weights pre-transposed (wqkv_t = W_qkv.T, wproj_t = W_proj.T); bf16 for the MXU."""
    k0, k1, k2 = jax.random.split(key, 3)
    s = 0.02
    return {
        "wqkv_t": (s * jax.random.normal(k0, (dim, 3 * dim), jnp.float32)).astype(dtype),
        "wproj_t": (s * jax.random.normal(k1, (dim, dim), jnp.float32)).astype(dtype),
        "bproj": s * jax.random.normal(k2, (1, dim), jnp.float32),
    }


if __name__ == "__main__":
    B, N, C = 8, 16, 128        # C multiple of 128 -> lane-dense blocks, unmasked stores
    num_heads = 8               # head_dim = 16 (module default num_heads)

    key = jax.random.PRNGKey(0)
    kx, kp = jax.random.split(key)
    x = jax.random.normal(kx, (B, N, C), jnp.float32).astype(jnp.bfloat16)
    params = make_params(kp, C, dtype=jnp.bfloat16)

    out = jax.block_until_ready(attention_forward(x, params, num_heads))
    ref = reference_attention(x, params, num_heads)

    assert out.shape == (B, N, C)
    out_f32 = out.astype(jnp.float32)
    err = jnp.max(jnp.abs(out_f32 - ref))
    # bf16 MXU inputs + approx softmax reciprocal vs an exact f32 reference.
    assert jnp.allclose(out_f32, ref, atol=1e-2, rtol=1e-2), f"mismatch vs reference, max abs err {err}"

    print("KERNEL_OK")
</pallas_src>

<mosaic_0001>
module attributes {stable_mosaic.version = 11 : i64} {
  func.func @attention_kernel(%arg0: i32, %arg1: memref<2x16x128xbf16, #tpu.memory_space<vmem>>, %arg2: memref<128x384xbf16, #tpu.memory_space<vmem>>, %arg3: memref<128x128xbf16, #tpu.memory_space<vmem>>, %arg4: memref<1x128xf32, #tpu.memory_space<vmem>>, %arg5: memref<2x16x128xbf16, #tpu.memory_space<vmem>>) attributes {dimension_semantics = [#tpu.dimension_semantics<parallel>], iteration_bounds = array<i64: 4>, scalar_prefetch = 0 : i64, scratch_operands = 0 : i64, tpu.core_type = #tpu.core_type<tc>, window_params = [{transform_indices = @transform_0, window_bounds = array<i64: 2, 16, 128>}, {pipeline_mode = #tpu.pipeline_mode<synchronous>, transform_indices = @transform_1, window_bounds = array<i64: 128, 384>}, {pipeline_mode = #tpu.pipeline_mode<synchronous>, transform_indices = @transform_2, window_bounds = array<i64: 128, 128>}, {pipeline_mode = #tpu.pipeline_mode<synchronous>, transform_indices = @transform_3, window_bounds = array<i64: 1, 128>}, {transform_indices = @transform_4, window_bounds = array<i64: 2, 16, 128>}]} {
    %c0 = arith.constant 0 : index
    %c0_0 = arith.constant 0 : index
    %c0_1 = arith.constant 0 : index
    %0 = vector.load %arg1[%c0, %c0_0, %c0_1] : memref<2x16x128xbf16, #tpu.memory_space<vmem>>, vector<2x16x128xbf16>
    %1 = vector.shape_cast %0 : vector<2x16x128xbf16> to vector<32x128xbf16>
    %c0_2 = arith.constant 0 : index
    %c0_3 = arith.constant 0 : index
    %2 = vector.load %arg2[%c0_2, %c0_3] : memref<128x384xbf16, #tpu.memory_space<vmem>>, vector<128x384xbf16>
    %cst = arith.constant dense<0.000000e+00> : vector<32x384xf32>
    %3 = tpu.matmul %1, %2, %cst {dimension_numbers = #tpu.dot_dimension_numbers<[1], [0], [0], [1], [0, 0, 1, 1], [], []>} : vector<32x128xbf16>, vector<128x384xbf16>, vector<32x384xf32> -> vector<32x384xf32>
    %4 = vector.extract_strided_slice %3 {offsets = [0, 0], sizes = [16, 16], strides = [1, 1]} : vector<32x384xf32> to vector<16x16xf32>
    %cst_4 = arith.constant 2.500000e-01 : f32
    %5 = vector.broadcast %cst_4 : f32 to vector<16x16xf32>
    %6 = arith.mulf %4, %5 : vector<16x16xf32>
    %7 = vector.extract_strided_slice %3 {offsets = [0, 128], sizes = [16, 16], strides = [1, 1]} : vector<32x384xf32> to vector<16x16xf32>
    %8 = vector.extract_strided_slice %3 {offsets = [0, 256], sizes = [16, 16], strides = [1, 1]} : vector<32x384xf32> to vector<16x16xf32>
    "tpu.trace_start"() <{level = 10 : i32, message = "nd,md->nm"}> : () -> ()
    %cst_5 = arith.constant dense<0.000000e+00> : vector<16x16xf32>
    %9 = tpu.matmul %6, %7, %cst_5 {dimension_numbers = #tpu.dot_dimension_numbers<[1], [1], [0], [0], [0, 0, 1, 0], [], []>} : vector<16x16xf32>, vector<16x16xf32>, vector<16x16xf32> -> vector<16x16xf32>
    "tpu.trace_stop"() : () -> ()
    %cst_6 = arith.constant dense<0xFF800000> : vector<16xf32>
    %10 = vector.multi_reduction <maximumf>, %9, %cst_6 [1] : vector<16x16xf32> to vector<16xf32>
    %11 = vector.shape_cast %10 : vector<16xf32> to vector<16x1xf32>
    %12 = vector.broadcast %11 : vector<16x1xf32> to vector<16x16xf32>
    %13 = arith.subf %9, %12 : vector<16x16xf32>
    %14 = math.exp %13 : vector<16x16xf32>
    %cst_7 = arith.constant dense<0.000000e+00> : vector<16xf32>
    %15 = vector.multi_reduction <add>, %14, %cst_7 [1] : vector<16x16xf32> to vector<16xf32>
    %16 = vector.shape_cast %15 : vector<16xf32> to vector<16x1xf32>
    %cst_8 = arith.constant dense<0.000000e+00> : vector<16x16xf32>
    %17 = tpu.matmul %14, %8, %cst_8 {dimension_numbers = #tpu.dot_dimension_numbers<[1], [0], [0], [1], [0, 0, 1, 1], [], []>} : vector<16x16xf32>, vector<16x16xf32>, vector<16x16xf32> -> vector<16x16xf32>
    %18 = tpu.reciprocal %16 {approx = true} : vector<16x1xf32> -> vector<16x1xf32>
    %19 = vector.broadcast %18 : vector<16x1xf32> to vector<16x16xf32>
    %20 = arith.mulf %17, %19 : vector<16x16xf32>
    %21 = vector.extract_strided_slice %3 {offsets = [0, 16], sizes = [16, 16], strides = [1, 1]} : vector<32x384xf32> to vector<16x16xf32>
    %cst_9 = arith.constant 2.500000e-01 : f32
    %22 = vector.broadcast %cst_9 : f32 to vector<16x16xf32>
    %23 = arith.mulf %21, %22 : vector<16x16xf32>
    %24 = vector.extract_strided_slice %3 {offsets = [0, 144], sizes = [16, 16], strides = [1, 1]} : vector<32x384xf32> to vector<16x16xf32>
    %25 = vector.extract_strided_slice %3 {offsets = [0, 272], sizes = [16, 16], strides = [1, 1]} : vector<32x384xf32> to vector<16x16xf32>
    "tpu.trace_start"() <{level = 10 : i32, message = "nd,md->nm"}> : () -> ()
    %cst_10 = arith.constant dense<0.000000e+00> : vector<16x16xf32>
    %26 = tpu.matmul %23, %24, %cst_10 {dimension_numbers = #tpu.dot_dimension_numbers<[1], [1], [0], [0], [0, 0, 1, 0], [], []>} : vector<16x16xf32>, vector<16x16xf32>, vector<16x16xf32> -> vector<16x16xf32>
    "tpu.trace_stop"() : () -> ()
    %cst_11 = arith.constant dense<0xFF800000> : vector<16xf32>
    %27 = vector.multi_reduction <maximumf>, %26, %cst_11 [1] : vector<16x16xf32> to vector<16xf32>
    %28 = vector.shape_cast %27 : vector<16xf32> to vector<16x1xf32>
    %29 = vector.broadcast %28 : vector<16x1xf32> to vector<16x16xf32>
    %30 = arith.subf %26, %29 : vector<16x16xf32>
    %31 = math.exp %30 : vector<16x16xf32>
    %cst_12 = arith.constant dense<0.000000e+00> : vector<16xf32>
    %32 = vector.multi_reduction <add>, %31, %cst_12 [1] : vector<16x16xf32> to vector<16xf32>
    %33 = vector.shape_cast %32 : vector<16xf32> to vector<16x1xf32>
    %cst_13 = arith.constant dense<0.000000e+00> : vector<16x16xf32>
    %34 = tpu.matmul %31, %25, %cst_13 {dimension_numbers = #tpu.dot_dimension_numbers<[1], [0], [0], [1], [0, 0, 1, 1], [], []>} : vector<16x16xf32>, vector<16x16xf32>, vector<16x16xf32> -> vector<16x16xf32>
    %35 = tpu.reciprocal %33 {approx = true} : vector<16x1xf32> -> vector<16x1xf32>
    %36 = vector.broadcast %35 : vector<16x1xf32> to vector<16x16xf32>
    %37 = arith.mulf %34, %36 : vector<16x16xf32>
    %38 = vector.extract_strided_slice %3 {offsets = [0, 32], sizes = [16, 16], strides = [1, 1]} : vector<32x384xf32> to vector<16x16xf32>
    %cst_14 = arith.constant 2.500000e-01 : f32
    %39 = vector.broadcast %cst_14 : f32 to vector<16x16xf32>
    %40 = arith.mulf %38, %39 : vector<16x16xf32>
    %41 = vector.extract_strided_slice %3 {offsets = [0, 160], sizes = [16, 16], strides = [1, 1]} : vector<32x384xf32> to vector<16x16xf32>
    %42 = vector.extract_strided_slice %3 {offsets = [0, 288], sizes = [16, 16], strides = [1, 1]} : vector<32x384xf32> to vector<16x16xf32>
    "tpu.trace_start"() <{level = 10 : i32, message = "nd,md->nm"}> : () -> ()
    %cst_15 = arith.constant dense<0.000000e+00> : vector<16x16xf32>
    %43 = tpu.matmul %40, %41, %cst_15 {dimension_numbers = #tpu.dot_dimension_numbers<[1], [1], [0], [0], [0, 0, 1, 0], [], []>} : vector<16x16xf32>, vector<16x16xf32>, vector<16x16xf32> -> vector<16x16xf32>
    "tpu.trace_stop"() : () -> ()
    %cst_16 = arith.constant dense<0xFF800000> : vector<16xf32>
    %44 = vector.multi_reduction <maximumf>, %43, %cst_16 [1] : vector<16x16xf32> to vector<16xf32>
    %45 = vector.shape_cast %44 : vector<16xf32> to vector<16x1xf32>
    %46 = vector.broadcast %45 : vector<16x1xf32> to vector<16x16xf32>
    %47 = arith.subf %43, %46 : vector<16x16xf32>
    %48 = math.exp %47 : vector<16x16xf32>
    %cst_17 = arith.constant dense<0.000000e+00> : vector<16xf32>
    %49 = vector.multi_reduction <add>, %48, %cst_17 [1] : vector<16x16xf32> to vector<16xf32>
    %50 = vector.shape_cast %49 : vector<16xf32> to vector<16x1xf32>
    %cst_18 = arith.constant dense<0.000000e+00> : vector<16x16xf32>
    %51 = tpu.matmul %48, %42, %cst_18 {dimension_numbers = #tpu.dot_dimension_numbers<[1], [0], [0], [1], [0, 0, 1, 1], [], []>} : vector<16x16xf32>, vector<16x16xf32>, vector<16x16xf32> -> vector<16x16xf32>
    %52 = tpu.reciprocal %50 {approx = true} : vector<16x1xf32> -> vector<16x1xf32>
    %53 = vector.broadcast %52 : vector<16x1xf32> to vector<16x16xf32>
    %54 = arith.mulf %51, %53 : vector<16x16xf32>
    %55 = vector.extract_strided_slice %3 {offsets = [0, 48], sizes = [16, 16], strides = [1, 1]} : vector<32x384xf32> to vector<16x16xf32>
    %cst_19 = arith.constant 2.500000e-01 : f32
    %56 = vector.broadcast %cst_19 : f32 to vector<16x16xf32>
    %57 = arith.mulf %55, %56 : vector<16x16xf32>
    %58 = vector.extract_strided_slice %3 {offsets = [0, 176], sizes = [16, 16], strides = [1, 1]} : vector<32x384xf32> to vector<16x16xf32>
    %59 = vector.extract_strided_slice %3 {offsets = [0, 304], sizes = [16, 16], strides = [1, 1]} : vector<32x384xf32> to vector<16x16xf32>
    "tpu.trace_start"() <{level = 10 : i32, message = "nd,md->nm"}> : () -> ()
    %cst_20 = arith.constant dense<0.000000e+00> : vector<16x16xf32>
    %60 = tpu.matmul %57, %58, %cst_20 {dimension_numbers = #tpu.dot_dimension_numbers<[1], [1], [0], [0], [0, 0, 1, 0], [], []>} : vector<16x16xf32>, vector<16x16xf32>, vector<16x16xf32> -> vector<16x16xf32>
    "tpu.trace_stop"() : () -> ()
    %cst_21 = arith.constant dense<0xFF800000> : vector<16xf32>
    %61 = vector.multi_reduction <maximumf>, %60, %cst_21 [1] : vector<16x16xf32> to vector<16xf32>
    %62 = vector.shape_cast %61 : vector<16xf32> to vector<16x1xf32>
    %63 = vector.broadcast %62 : vector<16x1xf32> to vector<16x16xf32>
    %64 = arith.subf %60, %63 : vector<16x16xf32>
    %65 = math.exp %64 : vector<16x16xf32>
    %cst_22 = arith.constant dense<0.000000e+00> : vector<16xf32>
    %66 = vector.multi_reduction <add>, %65, %cst_22 [1] : vector<16x16xf32> to vector<16xf32>
    %67 = vector.shape_cast %66 : vector<16xf32> to vector<16x1xf32>
    %cst_23 = arith.constant dense<0.000000e+00> : vector<16x16xf32>
    %68 = tpu.matmul %65, %59, %cst_23 {dimension_numbers = #tpu.dot_dimension_numbers<[1], [0], [0], [1], [0, 0, 1, 1], [], []>} : vector<16x16xf32>, vector<16x16xf32>, vector<16x16xf32> -> vector<16x16xf32>
    %69 = tpu.reciprocal %67 {approx = true} : vector<16x1xf32> -> vector<16x1xf32>
    %70 = vector.broadcast %69 : vector<16x1xf32> to vector<16x16xf32>
    %71 = arith.mulf %68, %70 : vector<16x16xf32>
    %72 = vector.extract_strided_slice %3 {offsets = [0, 64], sizes = [16, 16], strides = [1, 1]} : vector<32x384xf32> to vector<16x16xf32>
    %cst_24 = arith.constant 2.500000e-01 : f32
    %73 = vector.broadcast %cst_24 : f32 to vector<16x16xf32>
    %74 = arith.mulf %72, %73 : vector<16x16xf32>
    %75 = vector.extract_strided_slice %3 {offsets = [0, 192], sizes = [16, 16], strides = [1, 1]} : vector<32x384xf32> to vector<16x16xf32>
    %76 = vector.extract_strided_slice %3 {offsets = [0, 320], sizes = [16, 16], strides = [1, 1]} : vector<32x384xf32> to vector<16x16xf32>
    "tpu.trace_start"() <{level = 10 : i32, message = "nd,md->nm"}> : () -> ()
    %cst_25 = arith.constant dense<0.000000e+00> : vector<16x16xf32>
    %77 = tpu.matmul %74, %75, %cst_25 {dimension_numbers = #tpu.dot_dimension_numbers<[1], [1], [0], [0], [0, 0, 1, 0], [], []>} : vector<16x16xf32>, vector<16x16xf32>, vector<16x16xf32> -> vector<16x16xf32>
    "tpu.trace_stop"() : () -> ()
    %cst_26 = arith.constant dense<0xFF800000> : vector<16xf32>
    %78 = vector.multi_reduction <maximumf>, %77, %cst_26 [1] : vector<16x16xf32> to vector<16xf32>
    %79 = vector.shape_cast %78 : vector<16xf32> to vector<16x1xf32>
    %80 = vector.broadcast %79 : vector<16x1xf32> to vector<16x16xf32>
    %81 = arith.subf %77, %80 : vector<16x16xf32>
    %82 = math.exp %81 : vector<16x16xf32>
    %cst_27 = arith.constant dense<0.000000e+00> : vector<16xf32>
    %83 = vector.multi_reduction <add>, %82, %cst_27 [1] : vector<16x16xf32> to vector<16xf32>
    %84 = vector.shape_cast %83 : vector<16xf32> to vector<16x1xf32>
    %cst_28 = arith.constant dense<0.000000e+00> : vector<16x16xf32>
    %85 = tpu.matmul %82, %76, %cst_28 {dimension_numbers = #tpu.dot_dimension_numbers<[1], [0], [0], [1], [0, 0, 1, 1], [], []>} : vector<16x16xf32>, vector<16x16xf32>, vector<16x16xf32> -> vector<16x16xf32>
    %86 = tpu.reciprocal %84 {approx = true} : vector<16x1xf32> -> vector<16x1xf32>
    %87 = vector.broadcast %86 : vector<16x1xf32> to vector<16x16xf32>
    %88 = arith.mulf %85, %87 : vector<16x16xf32>
    %89 = vector.extract_strided_slice %3 {offsets = [0, 80], sizes = [16, 16], strides = [1, 1]} : vector<32x384xf32> to vector<16x16xf32>
    %cst_29 = arith.constant 2.500000e-01 : f32
    %90 = vector.broadcast %cst_29 : f32 to vector<16x16xf32>
    %91 = arith.mulf %89, %90 : vector<16x16xf32>
    %92 = vector.extract_strided_slice %3 {offsets = [0, 208], sizes = [16, 16], strides = [1, 1]} : vector<32x384xf32> to vector<16x16xf32>
    %93 = vector.extract_strided_slice %3 {offsets = [0, 336], sizes = [16, 16], strides = [1, 1]} : vector<32x384xf32> to vector<16x16xf32>
    "tpu.trace_start"() <{level = 10 : i32, message = "nd,md->nm"}> : () -> ()
    %cst_30 = arith.constant dense<0.000000e+00> : vector<16x16xf32>
    %94 = tpu.matmul %91, %92, %cst_30 {dimension_numbers = #tpu.dot_dimension_numbers<[1], [1], [0], [0], [0, 0, 1, 0], [], []>} : vector<16x16xf32>, vector<16x16xf32>, vector<16x16xf32> -> vector<16x16xf32>
    "tpu.trace_stop"() : () -> ()
    %cst_31 = arith.constant dense<0xFF800000> : vector<16xf32>
    %95 = vector.multi_reduction <maximumf>, %94, %cst_31 [1] : vector<16x16xf32> to vector<16xf32>
    %96 = vector.shape_cast %95 : vector<16xf32> to vector<16x1xf32>
    %97 = vector.broadcast %96 : vector<16x1xf32> to vector<16x16xf32>
    %98 = arith.subf %94, %97 : vector<16x16xf32>
    %99 = math.exp %98 : vector<16x16xf32>
    %cst_32 = arith.constant dense<0.000000e+00> : vector<16xf32>
    %100 = vector.multi_reduction <add>, %99, %cst_32 [1] : vector<16x16xf32> to vector<16xf32>
    %101 = vector.shape_cast %100 : vector<16xf32> to vector<16x1xf32>
    %cst_33 = arith.constant dense<0.000000e+00> : vector<16x16xf32>
    %102 = tpu.matmul %99, %93, %cst_33 {dimension_numbers = #tpu.dot_dimension_numbers<[1], [0], [0], [1], [0, 0, 1, 1], [], []>} : vector<16x16xf32>, vector<16x16xf32>, vector<16x16xf32> -> vector<16x16xf32>
    %103 = tpu.reciprocal %101 {approx = true} : vector<16x1xf32> -> vector<16x1xf32>
    %104 = vector.broadcast %103 : vector<16x1xf32> to vector<16x16xf32>
    %105 = arith.mulf %102, %104 : vector<16x16xf32>
    %106 = vector.extract_strided_slice %3 {offsets = [0, 96], sizes = [16, 16], strides = [1, 1]} : vector<32x384xf32> to vector<16x16xf32>
    %cst_34 = arith.constant 2.500000e-01 : f32
    %107 = vector.broadcast %cst_34 : f32 to vector<16x16xf32>
    %108 = arith.mulf %106, %107 : vector<16x16xf32>
    %109 = vector.extract_strided_slice %3 {offsets = [0, 224], sizes = [16, 16], strides = [1, 1]} : vector<32x384xf32> to vector<16x16xf32>
    %110 = vector.extract_strided_slice %3 {offsets = [0, 352], sizes = [16, 16], strides = [1, 1]} : vector<32x384xf32> to vector<16x16xf32>
    "tpu.trace_start"() <{level = 10 : i32, message = "nd,md->nm"}> : () -> ()
    %cst_35 = arith.constant dense<0.000000e+00> : vector<16x16xf32>
    %111 = tpu.matmul %108, %109, %cst_35 {dimension_numbers = #tpu.dot_dimension_numbers<[1], [1], [0], [0], [0, 0, 1, 0], [], []>} : vector<16x16xf32>, vector<16x16xf32>, vector<16x16xf32> -> vector<16x16xf32>
    "tpu.trace_stop"() : () -> ()
    %cst_36 = arith.constant dense<0xFF800000> : vector<16xf32>
    %112 = vector.multi_reduction <maximumf>, %111, %cst_36 [1] : vector<16x16xf32> to vector<16xf32>
    %113 = vector.shape_cast %112 : vector<16xf32> to vector<16x1xf32>
    %114 = vector.broadcast %113 : vector<16x1xf32> to vector<16x16xf32>
    %115 = arith.subf %111, %114 : vector<16x16xf32>
    %116 = math.exp %115 : vector<16x16xf32>
    %cst_37 = arith.constant dense<0.000000e+00> : vector<16xf32>
    %117 = vector.multi_reduction <add>, %116, %cst_37 [1] : vector<16x16xf32> to vector<16xf32>
    %118 = vector.shape_cast %117 : vector<16xf32> to vector<16x1xf32>
    %cst_38 = arith.constant dense<0.000000e+00> : vector<16x16xf32>
    %119 = tpu.matmul %116, %110, %cst_38 {dimension_numbers = #tpu.dot_dimension_numbers<[1], [0], [0], [1], [0, 0, 1, 1], [], []>} : vector<16x16xf32>, vector<16x16xf32>, vector<16x16xf32> -> vector<16x16xf32>
    %120 = tpu.reciprocal %118 {approx = true} : vector<16x1xf32> -> vector<16x1xf32>
    %121 = vector.broadcast %120 : vector<16x1xf32> to vector<16x16xf32>
    %122 = arith.mulf %119, %121 : vector<16x16xf32>
    %123 = vector.extract_strided_slice %3 {offsets = [0, 112], sizes = [16, 16], strides = [1, 1]} : vector<32x384xf32> to vector<16x16xf32>
    %cst_39 = arith.constant 2.500000e-01 : f32
    %124 = vector.broadcast %cst_39 : f32 to vector<16x16xf32>
    %125 = arith.mulf %123, %124 : vector<16x16xf32>
    %126 = vector.extract_strided_slice %3 {offsets = [0, 240], sizes = [16, 16], strides = [1, 1]} : vector<32x384xf32> to vector<16x16xf32>
    %127 = vector.extract_strided_slice %3 {offsets = [0, 368], sizes = [16, 16], strides = [1, 1]} : vector<32x384xf32> to vector<16x16xf32>
    "tpu.trace_start"() <{level = 10 : i32, message = "nd,md->nm"}> : () -> ()
    %cst_40 = arith.constant dense<0.000000e+00> : vector<16x16xf32>
    %128 = tpu.matmul %125, %126, %cst_40 {dimension_numbers = #tpu.dot_dimension_numbers<[1], [1], [0], [0], [0, 0, 1, 0], [], []>} : vector<16x16xf32>, vector<16x16xf32>, vector<16x16xf32> -> vector<16x16xf32>
    "tpu.trace_stop"() : () -> ()
    %cst_41 = arith.constant dense<0xFF800000> : vector<16xf32>
    %129 = vector.multi_reduction <maximumf>, %128, %cst_41 [1] : vector<16x16xf32> to vector<16xf32>
    %130 = vector.shape_cast %129 : vector<16xf32> to vector<16x1xf32>
    %131 = vector.broadcast %130 : vector<16x1xf32> to vector<16x16xf32>
    %132 = arith.subf %128, %131 : vector<16x16xf32>
    %133 = math.exp %132 : vector<16x16xf32>
    %cst_42 = arith.constant dense<0.000000e+00> : vector<16xf32>
    %134 = vector.multi_reduction <add>, %133, %cst_42 [1] : vector<16x16xf32> to vector<16xf32>
    %135 = vector.shape_cast %134 : vector<16xf32> to vector<16x1xf32>
    %cst_43 = arith.constant dense<0.000000e+00> : vector<16x16xf32>
    %136 = tpu.matmul %133, %127, %cst_43 {dimension_numbers = #tpu.dot_dimension_numbers<[1], [0], [0], [1], [0, 0, 1, 1], [], []>} : vector<16x16xf32>, vector<16x16xf32>, vector<16x16xf32> -> vector<16x16xf32>
    %137 = tpu.reciprocal %135 {approx = true} : vector<16x1xf32> -> vector<16x1xf32>
    %138 = vector.broadcast %137 : vector<16x1xf32> to vector<16x16xf32>
    %139 = arith.mulf %136, %138 : vector<16x16xf32>
    %140 = tpu.concatenate %20, %37, %54, %71, %88, %105, %122, %139 in 1 : vector<16x16xf32>, vector<16x16xf32>, vector<16x16xf32>, vector<16x16xf32>, vector<16x16xf32>, vector<16x16xf32>, vector<16x16xf32>, vector<16x16xf32> -> vector<16x128xf32>
    %141 = vector.extract_strided_slice %3 {offsets = [16, 0], sizes = [16, 16], strides = [1, 1]} : vector<32x384xf32> to vector<16x16xf32>
    %cst_44 = arith.constant 2.500000e-01 : f32
    %142 = vector.broadcast %cst_44 : f32 to vector<16x16xf32>
    %143 = arith.mulf %141, %142 : vector<16x16xf32>
    %144 = vector.extract_strided_slice %3 {offsets = [16, 128], sizes = [16, 16], strides = [1, 1]} : vector<32x384xf32> to vector<16x16xf32>
    %145 = vector.extract_strided_slice %3 {offsets = [16, 256], sizes = [16, 16], strides = [1, 1]} : vector<32x384xf32> to vector<16x16xf32>
    "tpu.trace_start"() <{level = 10 : i32, message = "nd,md->nm"}> : () -> ()
    %cst_45 = arith.constant dense<0.000000e+00> : vector<16x16xf32>
    %146 = tpu.matmul %143, %144, %cst_45 {dimension_numbers = #tpu.dot_dimension_numbers<[1], [1], [0], [0], [0, 0, 1, 0], [], []>} : vector<16x16xf32>, vector<16x16xf32>, vector<16x16xf32> -> vector<16x16xf32>
    "tpu.trace_stop"() : () -> ()
    %cst_46 = arith.constant dense<0xFF800000> : vector<16xf32>
    %147 = vector.multi_reduction <maximumf>, %146, %cst_46 [1] : vector<16x16xf32> to vector<16xf32>
    %148 = vector.shape_cast %147 : vector<16xf32> to vector<16x1xf32>
    %149 = vector.broadcast %148 : vector<16x1xf32> to vector<16x16xf32>
    %150 = arith.subf %146, %149 : vector<16x16xf32>
    %151 = math.exp %150 : vector<16x16xf32>
    %cst_47 = arith.constant dense<0.000000e+00> : vector<16xf32>
    %152 = vector.multi_reduction <add>, %151, %cst_47 [1] : vector<16x16xf32> to vector<16xf32>
    %153 = vector.shape_cast %152 : vector<16xf32> to vector<16x1xf32>
    %cst_48 = arith.constant dense<0.000000e+00> : vector<16x16xf32>
    %154 = tpu.matmul %151, %145, %cst_48 {dimension_numbers = #tpu.dot_dimension_numbers<[1], [0], [0], [1], [0, 0, 1, 1], [], []>} : vector<16x16xf32>, vector<16x16xf32>, vector<16x16xf32> -> vector<16x16xf32>
    %155 = tpu.reciprocal %153 {approx = true} : vector<16x1xf32> -> vector<16x1xf32>
    %156 = vector.broadcast %155 : vector<16x1xf32> to vector<16x16xf32>
    %157 = arith.mulf %154, %156 : vector<16x16xf32>
    %158 = vector.extract_strided_slice %3 {offsets = [16, 16], sizes = [16, 16], strides = [1, 1]} : vector<32x384xf32> to vector<16x16xf32>
    %cst_49 = arith.constant 2.500000e-01 : f32
    %159 = vector.broadcast %cst_49 : f32 to vector<16x16xf32>
    %160 = arith.mulf %158, %159 : vector<16x16xf32>
    %161 = vector.extract_strided_slice %3 {offsets = [16, 144], sizes = [16, 16], strides = [1, 1]} : vector<32x384xf32> to vector<16x16xf32>
    %162 = vector.extract_strided_slice %3 {offsets = [16, 272], sizes = [16, 16], strides = [1, 1]} : vector<32x384xf32> to vector<16x16xf32>
    "tpu.trace_start"() <{level = 10 : i32, message = "nd,md->nm"}> : () -> ()
    %cst_50 = arith.constant dense<0.000000e+00> : vector<16x16xf32>
    %163 = tpu.matmul %160, %161, %cst_50 {dimension_numbers = #tpu.dot_dimension_numbers<[1], [1], [0], [0], [0, 0, 1, 0], [], []>} : vector<16x16xf32>, vector<16x16xf32>, vector<16x16xf32> -> vector<16x16xf32>
    "tpu.trace_stop"() : () -> ()
    %cst_51 = arith.constant dense<0xFF800000> : vector<16xf32>
    %164 = vector.multi_reduction <maximumf>, %163, %cst_51 [1] : vector<16x16xf32> to vector<16xf32>
    %165 = vector.shape_cast %164 : vector<16xf32> to vector<16x1xf32>
    %166 = vector.broadcast %165 : vector<16x1xf32> to vector<16x16xf32>
    %167 = arith.subf %163, %166 : vector<16x16xf32>
    %168 = math.exp %167 : vector<16x16xf32>
    %cst_52 = arith.constant dense<0.000000e+00> : vector<16xf32>
    %169 = vector.multi_reduction <add>, %168, %cst_52 [1] : vector<16x16xf32> to vector<16xf32>
    %170 = vector.shape_cast %169 : vector<16xf32> to vector<16x1xf32>
    %cst_53 = arith.constant dense<0.000000e+00> : vector<16x16xf32>
    %171 = tpu.matmul %168, %162, %cst_53 {dimension_numbers = #tpu.dot_dimension_numbers<[1], [0], [0], [1], [0, 0, 1, 1], [], []>} : vector<16x16xf32>, vector<16x16xf32>, vector<16x16xf32> -> vector<16x16xf32>
    %172 = tpu.reciprocal %170 {approx = true} : vector<16x1xf32> -> vector<16x1xf32>
    %173 = vector.broadcast %172 : vector<16x1xf32> to vector<16x16xf32>
    %174 = arith.mulf %171, %173 : vector<16x16xf32>
    %175 = vector.extract_strided_slice %3 {offsets = [16, 32], sizes = [16, 16], strides = [1, 1]} : vector<32x384xf32> to vector<16x16xf32>
    %cst_54 = arith.constant 2.500000e-01 : f32
    %176 = vector.broadcast %cst_54 : f32 to vector<16x16xf32>
    %177 = arith.mulf %175, %176 : vector<16x16xf32>
    %178 = vector.extract_strided_slice %3 {offsets = [16, 160], sizes = [16, 16], strides = [1, 1]} : vector<32x384xf32> to vector<16x16xf32>
    %179 = vector.extract_strided_slice %3 {offsets = [16, 288], sizes = [16, 16], strides = [1, 1]} : vector<32x384xf32> to vector<16x16xf32>
    "tpu.trace_start"() <{level = 10 : i32, message = "nd,md->nm"}> : () -> ()
    %cst_55 = arith.constant dense<0.000000e+00> : vector<16x16xf32>
    %180 = tpu.matmul %177, %178, %cst_55 {dimension_numbers = #tpu.dot_dimension_numbers<[1], [1], [0], [0], [0, 0, 1, 0], [], []>} : vector<16x16xf32>, vector<16x16xf32>, vector<16x16xf32> -> vector<16x16xf32>
    "tpu.trace_stop"() : () -> ()
    %cst_56 = arith.constant dense<0xFF800000> : vector<16xf32>
    %181 = vector.multi_reduction <maximumf>, %180, %cst_56 [1] : vector<16x16xf32> to vector<16xf32>
    %182 = vector.shape_cast %181 : vector<16xf32> to vector<16x1xf32>
    %183 = vector.broadcast %182 : vector<16x1xf32> to vector<16x16xf32>
    %184 = arith.subf %180, %183 : vector<16x16xf32>
    %185 = math.exp %184 : vector<16x16xf32>
    %cst_57 = arith.constant dense<0.000000e+00> : vector<16xf32>
    %186 = vector.multi_reduction <add>, %185, %cst_57 [1] : vector<16x16xf32> to vector<16xf32>
    %187 = vector.shape_cast %186 : vector<16xf32> to vector<16x1xf32>
    %cst_58 = arith.constant dense<0.000000e+00> : vector<16x16xf32>
    %188 = tpu.matmul %185, %179, %cst_58 {dimension_numbers = #tpu.dot_dimension_numbers<[1], [0], [0], [1], [0, 0, 1, 1], [], []>} : vector<16x16xf32>, vector<16x16xf32>, vector<16x16xf32> -> vector<16x16xf32>
    %189 = tpu.reciprocal %187 {approx = true} : vector<16x1xf32> -> vector<16x1xf32>
    %190 = vector.broadcast %189 : vector<16x1xf32> to vector<16x16xf32>
    %191 = arith.mulf %188, %190 : vector<16x16xf32>
    %192 = vector.extract_strided_slice %3 {offsets = [16, 48], sizes = [16, 16], strides = [1, 1]} : vector<32x384xf32> to vector<16x16xf32>
    %cst_59 = arith.constant 2.500000e-01 : f32
    %193 = vector.broadcast %cst_59 : f32 to vector<16x16xf32>
    %194 = arith.mulf %192, %193 : vector<16x16xf32>
    %195 = vector.extract_strided_slice %3 {offsets = [16, 176], sizes = [16, 16], strides = [1, 1]} : vector<32x384xf32> to vector<16x16xf32>
    %196 = vector.extract_strided_slice %3 {offsets = [16, 304], sizes = [16, 16], strides = [1, 1]} : vector<32x384xf32> to vector<16x16xf32>
    "tpu.trace_start"() <{level = 10 : i32, message = "nd,md->nm"}> : () -> ()
    %cst_60 = arith.constant dense<0.000000e+00> : vector<16x16xf32>
    %197 = tpu.matmul %194, %195, %cst_60 {dimension_numbers = #tpu.dot_dimension_numbers<[1], [1], [0], [0], [0, 0, 1, 0], [], []>} : vector<16x16xf32>, vector<16x16xf32>, vector<16x16xf32> -> vector<16x16xf32>
    "tpu.trace_stop"() : () -> ()
    %cst_61 = arith.constant dense<0xFF800000> : vector<16xf32>
    %198 = vector.multi_reduction <maximumf>, %197, %cst_61 [1] : vector<16x16xf32> to vector<16xf32>
    %199 = vector.shape_cast %198 : vector<16xf32> to vector<16x1xf32>
    %200 = vector.broadcast %199 : vector<16x1xf32> to vector<16x16xf32>
    %201 = arith.subf %197, %200 : vector<16x16xf32>
    %202 = math.exp %201 : vector<16x16xf32>
    %cst_62 = arith.constant dense<0.000000e+00> : vector<16xf32>
    %203 = vector.multi_reduction <add>, %202, %cst_62 [1] : vector<16x16xf32> to vector<16xf32>
    %204 = vector.shape_cast %203 : vector<16xf32> to vector<16x1xf32>
    %cst_63 = arith.constant dense<0.000000e+00> : vector<16x16xf32>
    %205 = tpu.matmul %202, %196, %cst_63 {dimension_numbers = #tpu.dot_dimension_numbers<[1], [0], [0], [1], [0, 0, 1, 1], [], []>} : vector<16x16xf32>, vector<16x16xf32>, vector<16x16xf32> -> vector<16x16xf32>
    %206 = tpu.reciprocal %204 {approx = true} : vector<16x1xf32> -> vector<16x1xf32>
    %207 = vector.broadcast %206 : vector<16x1xf32> to vector<16x16xf32>
    %208 = arith.mulf %205, %207 : vector<16x16xf32>
    %209 = vector.extract_strided_slice %3 {offsets = [16, 64], sizes = [16, 16], strides = [1, 1]} : vector<32x384xf32> to vector<16x16xf32>
    %cst_64 = arith.constant 2.500000e-01 : f32
    %210 = vector.broadcast %cst_64 : f32 to vector<16x16xf32>
    %211 = arith.mulf %209, %210 : vector<16x16xf32>
    %212 = vector.extract_strided_slice %3 {offsets = [16, 192], sizes = [16, 16], strides = [1, 1]} : vector<32x384xf32> to vector<16x16xf32>
    %213 = vector.extract_strided_slice %3 {offsets = [16, 320], sizes = [16, 16], strides = [1, 1]} : vector<32x384xf32> to vector<16x16xf32>
    "tpu.trace_start"() <{level = 10 : i32, message = "nd,md->nm"}> : () -> ()
    %cst_65 = arith.constant dense<0.000000e+00> : vector<16x16xf32>
    %214 = tpu.matmul %211, %212, %cst_65 {dimension_numbers = #tpu.dot_dimension_numbers<[1], [1], [0], [0], [0, 0, 1, 0], [], []>} : vector<16x16xf32>, vector<16x16xf32>, vector<16x16xf32> -> vector<16x16xf32>
    "tpu.trace_stop"() : () -> ()
    %cst_66 = arith.constant dense<0xFF800000> : vector<16xf32>
    %215 = vector.multi_reduction <maximumf>, %214, %cst_66 [1] : vector<16x16xf32> to vector<16xf32>
    %216 = vector.shape_cast %215 : vector<16xf32> to vector<16x1xf32>
    %217 = vector.broadcast %216 : vector<16x1xf32> to vector<16x16xf32>
    %218 = arith.subf %214, %217 : vector<16x16xf32>
    %219 = math.exp %218 : vector<16x16xf32>
    %cst_67 = arith.constant dense<0.000000e+00> : vector<16xf32>
    %220 = vector.multi_reduction <add>, %219, %cst_67 [1] : vector<16x16xf32> to vector<16xf32>
    %221 = vector.shape_cast %220 : vector<16xf32> to vector<16x1xf32>
    %cst_68 = arith.constant dense<0.000000e+00> : vector<16x16xf32>
    %222 = tpu.matmul %219, %213, %cst_68 {dimension_numbers = #tpu.dot_dimension_numbers<[1], [0], [0], [1], [0, 0, 1, 1], [], []>} : vector<16x16xf32>, vector<16x16xf32>, vector<16x16xf32> -> vector<16x16xf32>
    %223 = tpu.reciprocal %221 {approx = true} : vector<16x1xf32> -> vector<16x1xf32>
    %224 = vector.broadcast %223 : vector<16x1xf32> to vector<16x16xf32>
    %225 = arith.mulf %222, %224 : vector<16x16xf32>
    %226 = vector.extract_strided_slice %3 {offsets = [16, 80], sizes = [16, 16], strides = [1, 1]} : vector<32x384xf32> to vector<16x16xf32>
    %cst_69 = arith.constant 2.500000e-01 : f32
    %227 = vector.broadcast %cst_69 : f32 to vector<16x16xf32>
    %228 = arith.mulf %226, %227 : vector<16x16xf32>
    %229 = vector.extract_strided_slice %3 {offsets = [16, 208], sizes = [16, 16], strides = [1, 1]} : vector<32x384xf32> to vector<16x16xf32>
    %230 = vector.extract_strided_slice %3 {offsets = [16, 336], sizes = [16, 16], strides = [1, 1]} : vector<32x384xf32> to vector<16x16xf32>
    "tpu.trace_start"() <{level = 10 : i32, message = "nd,md->nm"}> : () -> ()
    %cst_70 = arith.constant dense<0.000000e+00> : vector<16x16xf32>
    %231 = tpu.matmul %228, %229, %cst_70 {dimension_numbers = #tpu.dot_dimension_numbers<[1], [1], [0], [0], [0, 0, 1, 0], [], []>} : vector<16x16xf32>, vector<16x16xf32>, vector<16x16xf32> -> vector<16x16xf32>
    "tpu.trace_stop"() : () -> ()
    %cst_71 = arith.constant dense<0xFF800000> : vector<16xf32>
    %232 = vector.multi_reduction <maximumf>, %231, %cst_71 [1] : vector<16x16xf32> to vector<16xf32>
    %233 = vector.shape_cast %232 : vector<16xf32> to vector<16x1xf32>
    %234 = vector.broadcast %233 : vector<16x1xf32> to vector<16x16xf32>
    %235 = arith.subf %231, %234 : vector<16x16xf32>
    %236 = math.exp %235 : vector<16x16xf32>
    %cst_72 = arith.constant dense<0.000000e+00> : vector<16xf32>
    %237 = vector.multi_reduction <add>, %236, %cst_72 [1] : vector<16x16xf32> to vector<16xf32>
    %238 = vector.shape_cast %237 : vector<16xf32> to vector<16x1xf32>
    %cst_73 = arith.constant dense<0.000000e+00> : vector<16x16xf32>
    %239 = tpu.matmul %236, %230, %cst_73 {dimension_numbers = #tpu.dot_dimension_numbers<[1], [0], [0], [1], [0, 0, 1, 1], [], []>} : vector<16x16xf32>, vector<16x16xf32>, vector<16x16xf32> -> vector<16x16xf32>
    %240 = tpu.reciprocal %238 {approx = true} : vector<16x1xf32> -> vector<16x1xf32>
    %241 = vector.broadcast %240 : vector<16x1xf32> to vector<16x16xf32>
    %242 = arith.mulf %239, %241 : vector<16x16xf32>
    %243 = vector.extract_strided_slice %3 {offsets = [16, 96], sizes = [16, 16], strides = [1, 1]} : vector<32x384xf32> to vector<16x16xf32>
    %cst_74 = arith.constant 2.500000e-01 : f32
    %244 = vector.broadcast %cst_74 : f32 to vector<16x16xf32>
    %245 = arith.mulf %243, %244 : vector<16x16xf32>
    %246 = vector.extract_strided_slice %3 {offsets = [16, 224], sizes = [16, 16], strides = [1, 1]} : vector<32x384xf32> to vector<16x16xf32>
    %247 = vector.extract_strided_slice %3 {offsets = [16, 352], sizes = [16, 16], strides = [1, 1]} : vector<32x384xf32> to vector<16x16xf32>
    "tpu.trace_start"() <{level = 10 : i32, message = "nd,md->nm"}> : () -> ()
    %cst_75 = arith.constant dense<0.000000e+00> : vector<16x16xf32>
    %248 = tpu.matmul %245, %246, %cst_75 {dimension_numbers = #tpu.dot_dimension_numbers<[1], [1], [0], [0], [0, 0, 1, 0], [], []>} : vector<16x16xf32>, vector<16x16xf32>, vector<16x16xf32> -> vector<16x16xf32>
    "tpu.trace_stop"() : () -> ()
    %cst_76 = arith.constant dense<0xFF800000> : vector<16xf32>
    %249 = vector.multi_reduction <maximumf>, %248, %cst_76 [1] : vector<16x16xf32> to vector<16xf32>
    %250 = vector.shape_cast %249 : vector<16xf32> to vector<16x1xf32>
    %251 = vector.broadcast %250 : vector<16x1xf32> to vector<16x16xf32>
    %252 = arith.subf %248, %251 : vector<16x16xf32>
    %253 = math.exp %252 : vector<16x16xf32>
    %cst_77 = arith.constant dense<0.000000e+00> : vector<16xf32>
    %254 = vector.multi_reduction <add>, %253, %cst_77 [1] : vector<16x16xf32> to vector<16xf32>
    %255 = vector.shape_cast %254 : vector<16xf32> to vector<16x1xf32>
    %cst_78 = arith.constant dense<0.000000e+00> : vector<16x16xf32>
    %256 = tpu.matmul %253, %247, %cst_78 {dimension_numbers = #tpu.dot_dimension_numbers<[1], [0], [0], [1], [0, 0, 1, 1], [], []>} : vector<16x16xf32>, vector<16x16xf32>, vector<16x16xf32> -> vector<16x16xf32>
    %257 = tpu.reciprocal %255 {approx = true} : vector<16x1xf32> -> vector<16x1xf32>
    %258 = vector.broadcast %257 : vector<16x1xf32> to vector<16x16xf32>
    %259 = arith.mulf %256, %258 : vector<16x16xf32>
    %260 = vector.extract_strided_slice %3 {offsets = [16, 112], sizes = [16, 16], strides = [1, 1]} : vector<32x384xf32> to vector<16x16xf32>
    %cst_79 = arith.constant 2.500000e-01 : f32
    %261 = vector.broadcast %cst_79 : f32 to vector<16x16xf32>
    %262 = arith.mulf %260, %261 : vector<16x16xf32>
    %263 = vector.extract_strided_slice %3 {offsets = [16, 240], sizes = [16, 16], strides = [1, 1]} : vector<32x384xf32> to vector<16x16xf32>
    %264 = vector.extract_strided_slice %3 {offsets = [16, 368], sizes = [16, 16], strides = [1, 1]} : vector<32x384xf32> to vector<16x16xf32>
    "tpu.trace_start"() <{level = 10 : i32, message = "nd,md->nm"}> : () -> ()
    %cst_80 = arith.constant dense<0.000000e+00> : vector<16x16xf32>
    %265 = tpu.matmul %262, %263, %cst_80 {dimension_numbers = #tpu.dot_dimension_numbers<[1], [1], [0], [0], [0, 0, 1, 0], [], []>} : vector<16x16xf32>, vector<16x16xf32>, vector<16x16xf32> -> vector<16x16xf32>
    "tpu.trace_stop"() : () -> ()
    %cst_81 = arith.constant dense<0xFF800000> : vector<16xf32>
    %266 = vector.multi_reduction <maximumf>, %265, %cst_81 [1] : vector<16x16xf32> to vector<16xf32>
    %267 = vector.shape_cast %266 : vector<16xf32> to vector<16x1xf32>
    %268 = vector.broadcast %267 : vector<16x1xf32> to vector<16x16xf32>
    %269 = arith.subf %265, %268 : vector<16x16xf32>
    %270 = math.exp %269 : vector<16x16xf32>
    %cst_82 = arith.constant dense<0.000000e+00> : vector<16xf32>
    %271 = vector.multi_reduction <add>, %270, %cst_82 [1] : vector<16x16xf32> to vector<16xf32>
    %272 = vector.shape_cast %271 : vector<16xf32> to vector<16x1xf32>
    %cst_83 = arith.constant dense<0.000000e+00> : vector<16x16xf32>
    %273 = tpu.matmul %270, %264, %cst_83 {dimension_numbers = #tpu.dot_dimension_numbers<[1], [0], [0], [1], [0, 0, 1, 1], [], []>} : vector<16x16xf32>, vector<16x16xf32>, vector<16x16xf32> -> vector<16x16xf32>
    %274 = tpu.reciprocal %272 {approx = true} : vector<16x1xf32> -> vector<16x1xf32>
    %275 = vector.broadcast %274 : vector<16x1xf32> to vector<16x16xf32>
    %276 = arith.mulf %273, %275 : vector<16x16xf32>
    %277 = tpu.concatenate %157, %174, %191, %208, %225, %242, %259, %276 in 1 : vector<16x16xf32>, vector<16x16xf32>, vector<16x16xf32>, vector<16x16xf32>, vector<16x16xf32>, vector<16x16xf32>, vector<16x16xf32>, vector<16x16xf32> -> vector<16x128xf32>
    %278 = tpu.concatenate %140, %277 in 0 : vector<16x128xf32>, vector<16x128xf32> -> vector<32x128xf32>
    %279 = arith.truncf %278 : vector<32x128xf32> to vector<32x128xbf16>
    %c0_84 = arith.constant 0 : index
    %c0_85 = arith.constant 0 : index
    %280 = vector.load %arg3[%c0_84, %c0_85] : memref<128x128xbf16, #tpu.memory_space<vmem>>, vector<128x128xbf16>
    %cst_86 = arith.constant dense<0.000000e+00> : vector<32x128xf32>
    %281 = tpu.matmul %279, %280, %cst_86 {dimension_numbers = #tpu.dot_dimension_numbers<[1], [0], [0], [1], [0, 0, 1, 1], [], []>} : vector<32x128xbf16>, vector<128x128xbf16>, vector<32x128xf32> -> vector<32x128xf32>
    %c0_87 = arith.constant 0 : index
    %c0_88 = arith.constant 0 : index
    %282 = vector.load %arg4[%c0_87, %c0_88] : memref<1x128xf32, #tpu.memory_space<vmem>>, vector<1x128xf32>
    %283 = vector.broadcast %282 : vector<1x128xf32> to vector<32x128xf32>
    %284 = arith.addf %281, %283 : vector<32x128xf32>
    %285 = vector.shape_cast %284 : vector<32x128xf32> to vector<2x16x128xf32>
    %286 = arith.truncf %285 : vector<2x16x128xf32> to vector<2x16x128xbf16>
    %c0_89 = arith.constant 0 : index
    %c0_90 = arith.constant 0 : index
    %c0_91 = arith.constant 0 : index
    %287 = vector.load %arg5[%c0_89, %c0_90, %c0_91] : memref<2x16x128xbf16, #tpu.memory_space<vmem>>, vector<2x16x128xbf16>
    tpu.vector_store %arg5[%c0_89, %c0_90, %c0_91], %286 {strides = array<i32>} : memref<2x16x128xbf16, #tpu.memory_space<vmem>>, vector<2x16x128xbf16>,
    return
  }
  func.func @transform_0(%arg0: i32) -> (i32, i32, i32) {
    %c0_i32 = arith.constant 0 : i32
    %c0_i32_0 = arith.constant 0 : i32
    %c0_i32_1 = arith.constant 0 : i32
    return %arg0, %c0_i32, %c0_i32_0 : i32, i32, i32
  }
  func.func @transform_1(%arg0: i32) -> (i32, i32) {
    %c0_i32 = arith.constant 0 : i32
    %c0_i32_0 = arith.constant 0 : i32
    %c0_i32_1 = arith.constant 0 : i32
    return %c0_i32, %c0_i32_0 : i32, i32
  }
  func.func @transform_2(%arg0: i32) -> (i32, i32) {
    %c0_i32 = arith.constant 0 : i32
    %c0_i32_0 = arith.constant 0 : i32
    %c0_i32_1 = arith.constant 0 : i32
    return %c0_i32, %c0_i32_0 : i32, i32
  }
  func.func @transform_3(%arg0: i32) -> (i32, i32) {
    %c0_i32 = arith.constant 0 : i32
    %c0_i32_0 = arith.constant 0 : i32
    %c0_i32_1 = arith.constant 0 : i32
    return %c0_i32, %c0_i32_0 : i32, i32
  }
  func.func @transform_4(%arg0: i32) -> (i32, i32, i32) {
    %c0_i32 = arith.constant 0 : i32
    %c0_i32_0 = arith.constant 0 : i32
    %c0_i32_1 = arith.constant 0 : i32
    return %arg0, %c0_i32, %c0_i32_0 : i32, i32, i32
  }
}

</mosaic_0001>

<bundles_post_ra>
// kernel: tpu_custom_call.1
= control target key start
LH: loop header
LB: loop body
LE: loop exit
PB: predicated region body
PF: predicated region fallthrough
CT: control target
= control target key end

     0   :  { %9 = vsyncpa [#allocation3], 0  ;;  %s4076_s0 = inlined_call_operand.hbm [shape: bf16[8,16,128], index: 0, kind: input, shape index: {}]   ;;  %s4077_s1 = inlined_call_operand.hbm [shape: bf16[128,384], index: 1, kind: input, shape index: {}]   ;;  %s4078_s2 = inlined_call_operand.hbm [shape: bf16[128,128], index: 2, kind: input, shape index: {}]   ;;  %s4079_s3 = inlined_call_operand.vmem [shape: f32[1,128], index: 3, kind: input, shape index: {}]   ;;  %s4080_s4 = inlined_call_operand.hbm [shape: bf16[8,16,128], index: 4, kind: output, shape index: {}]  }
   0x1   :  { %11 = vsyncpa [#allocation3 + $0x1], 0 }
   0x2   :  { %12 = vsyncpa [#allocation6], 0 }
   0x3   :  { %13 = vsyncpa [#allocation4], 0 }
   0x4   :  { %15 = vsyncpa [#allocation4 + $0x1], 0  ;;  %s3216_s15 = smov 0   ;;  %s3218_s16 = smov 0  }
   0x5   :  { %s3220_s17 = smov 0   ;;  %s3222_s18 = smov 0  }
   0x6 LB: > { %s3237_s19 = sadd.s32 4294967295, %s3175_s18   ;;  %s2364_s20 = sadd.s32 4294967294, %s3175_s18   ;;  %s3175_s18 = sphi %s3222_s18, %s4089_s18   ;;  %s3171_s17 = sphi %s3220_s17, %s4088_s17   ;;  %s3167_s16 = sphi %s3218_s16, %s4087_s16   ;;  %s3163_s15 = sphi %s3216_s15, %s4086_s15  }
   0x7   : > { %p41_p0 = scmp.ne.s32.totalorder %s3167_s16, %s3163_s15  ;;  %p42_p1 = scmp.eq.s32.totalorder %s3237_s19, 0 }
   0x8   : > { %p128_p2 = scmp.eq.s32.totalorder %s3237_s19, 3  ;;  %p134_p3 = scmp.eq.s32.totalorder %s2364_s20, 3 }
   0x9   : > { %p3246_p4 = por %p42_p1, %p41_p0  ;;  %p2365_p5 = scmp.ge.s32.totalorder %s3175_s18, 1 }
   0xa   : > { %p3251_p6 = por %p134_p3, %p41_p0  ;;  %p141_p7 = scmp.lt.s32.totalorder %s3175_s18, 5 }
   0xb   : > { %s152_s25 = sshll.u32 %s4077_s1, 4  ;;  %s3177_s27 = smov [#allocation5]   ;;  %s153_s25 = int_to_ptr.hbm [resolvable:$true] %s152_s25 }
   0xc   : > { %p3259_p8 = pnand %p2365_p5, %p141_p7  ;;  %s154_s28 = sshll.u32 %s3177_s27, 4  ;;  %s155_s28 = int_to_ptr.vmem [resolvable:$true] %s154_s28 }
   0xd   : > { %s166_s5 = sshll.u32 %s4078_s2, 4  ;;  %s3178_s6 = smov 192   ;;  %s167_s5 = int_to_ptr.hbm [resolvable:$true] %s166_s5 }
   0xe   : > { %p2679_p9 = pneg %p3259_p8  ;;  %s3179_s7 = smov 12  }
   0xf   : > { %s3180_s8 = smov [#allocation7]   ;;  %s3181_s10 = smov 64  }
  0x10   : > { %p2680_p10 = pnand %p2679_p9, %p42_p1  ;;  %s168_s9 = sshll.u32 %s3180_s8, 4  ;;  %s169_s9 = int_to_ptr.vmem [resolvable:$true] %s168_s9 }
  0x11   : > { %s3182_s11 = smov 4   ;;  %s3274_s12 = sadd.s32 1, %s3175_s18  }
  0x12   : > { %2682 = dma.hbm_to_vmem [thread:$0]  (!%p2680_p10), %s153_s25, 3072, %s155_s28, [#allocation6], %s3178_s6, %s3178_s6, %s3179_s7  }
  0x13   : > { %2685 = dma.hbm_to_vmem [thread:$0]  (!%p2680_p10), %s167_s5, 1024, %s169_s9, [#allocation6], %s3181_s10, %s3181_s10, %s3182_s11  }
  0x14   : > { %s25_s13 = ssub.s32 %s3175_s18, %s3274_s12  ;;  %s28_s14 = sadd.s32 1, %s3171_s17 }
  0x15   : > { %p26_p11 = scmp.eq.s32.totalorder %s25_s13, 0  ;;  %p35_p12 = scmp.ne.s32.totalorder %s3171_s17, %s3167_s16 }
  0x16   : > { %p36_p13 = scmp.eq.s32.totalorder %s3175_s18, 0  ;;  %p2696_p5 = scmp.lt.s32.totalorder %s3175_s18, 4 }
  0x17   : > { %s3283_s20 = scalar_select %p26_p11, %s3171_s17, %s28_s14  }
  0x18   : > { %p37_p0 = por %p36_p13, %p35_p12  ;;  %p3287_p3 = por %p128_p2, %p35_p12 }
  0x19   : > { %s185_s24 = sand.u32 1, %s3171_s17   ;;  %s2617_s27 = sshll.u32 %s3175_s18, 4 }
  0x1a   : > { %s2369_s25 = sshll.u32 %s185_s24, 4  ;;  %s195_s30 = scalar_lea.hbm %s4076_s0, %s2617_s27 }
  0x1b   : > { %s189_s5 = scalar_lea.vmem [#allocation2], %s2369_s25  ;;  %s196_s7 = sshll.u32 %s195_s30, 4  ;;  %s197_s7 = int_to_ptr.hbm [resolvable:$true] %s196_s7 }
  0x1c   : > { %s198_s6 = sshll.u32 %s189_s5, 4  ;;  %p3297_p7 = pnand %p2696_p5, %p37_p0  ;;  %s199_s6 = int_to_ptr.vmem [resolvable:$true] %s198_s6 }
  0x1d   : > { %s186_s9 = scalar_lea.sflag [#allocation3], %s185_s24  ;;  %s3075_s13 = sshra.s32 %s197_s7, 4  ;;  %s3076_s13 = int_to_ptr.hbm [resolvable:$true] %s3075_s13 }
  0x1e   : > { %s3077_s14 = scalar_lea.hbm %s3076_s13, 16  ;;  %p3079_p9 = pneg %p3297_p7 }
  0x1f   : > { %p3078_p2 = scmp.ne.s32.totalorder %s3076_s13, %s3077_s14  ;;  %s3082_s28 = scalar_lea.hbm %s4076_s0, 64 }
  0x20   : > { %p3083_p12 = scmp.lt.s32.totalorder %s3076_s13, %s4076_s0  ;;  %p3084_p13 = scmp.lt.s32.totalorder %s3082_s28, %s3077_s14 }
  0x21   : > { %p3080_p10 = pnand %p3079_p9, %p3078_p2 }
  0x22   : > { %p3085_p0 = por %p3084_p13, %p3083_p12 }
  0x23   : > { %p3081_p11 = pneg %p3080_p10 }
  0x25   : > { %p3086_p5 = pnand %p3085_p0, %p3081_p11 }
  0x27   : > { %3089 = shalt.err (!%p3086_p5)
}
  0x28   : > { %2689 = dma.hbm_to_vmem [thread:$0]  (!%p3297_p7), %s197_s7, 256, %s199_s6, %s186_s9, %s3181_s10, %s3181_s10, %s3182_s11  }
  0x29   : > { %210 = sbr.rel (%p3259_p8) target bundleno = 1857 (0x741), region = 36  ;;  %s3317_s24 = sand.u32 (!%p3259_p8), 1, %s3167_s16  }
  0x2a   : > { %s2374_s5 = sshll.u32 (!%p3259_p8), %s3317_s24, 4  ;;  %s213_s13 = scalar_lea.sflag (!%p3259_p8), [#allocation3], %s3317_s24 }
  0x2b   : > { %s3323_s14 = scalar_lea.vmem (!%p3259_p8), [#allocation2], %s2374_s5 }
  0x2e   : > { %3150 = dma.done.wait (%p3246_p4), %s213_s13, 256  }
  0x2f   : > { %3152 = vsyncadd (%p3246_p4), %s213_s13, 4294967040 }
  0x30   : > { %3154 = dma.done.wait (%p42_p1), [#allocation6], 4096  }
  0x31   : > { %3156 = vsyncadd (%p42_p1), [#allocation6], 4294963200  ;;  %v2472_v0 = vld [vmem:[#allocation5 + $0xa8] sm:$0xf]  ;;  %v2642_v1 = vld [vmem:[#allocation5 + $0xb0] sm:$0xf0] }
  0x32   : > { %v2460_v2 = vld [vmem:[#allocation5 + $0x90] sm:$0xf]  ;;  %v2473_v3 = vor.u32 %v2642_v1, %v2472_v0  ;;  %v2639_v4 = vld [vmem:[#allocation5 + $0x98] sm:$0xf0]  ;;  %v2448_v6 = vld [vmem:[#allocation5 + $0x78] sm:$0xf] }
  0x33   : > { %v2461_v5 = vor.u32 %v2639_v4, %v2460_v2  ;;  %v2636_v7 = vld [vmem:[#allocation5 + $0x80] sm:$0xf0]  ;;  %v2436_v9 = vld [vmem:[#allocation5 + $0x60] sm:$0xf]  ;;  %v2633_v10 = vld [vmem:[#allocation5 + $0x68] sm:$0xf0] }
  0x34   : > { %430 = vmatpush.bf16.msra.mxu1 %v2473_v3  ;;  %v2449_v8 = vor.u32 %v2636_v7, %v2448_v6  ;;  %v2480_v11 = vld [vmem:[#allocation5 + $0xb0] sm:$0xf]  ;;  %v2643_v12 = vld [vmem:[#allocation5 + $0xb8] sm:$0xf0]  ;;  %v2437_v14 = vor.u32 %v2633_v10, %v2436_v9  ;;  %v2424_v15 = vld [vmem:[#allocation5 + $0x48] sm:$0xf] }
  0x35   : > { %v2481_v13 = vor.u32 %v2643_v12, %v2480_v11  ;;  %v2630_v16 = vld [vmem:[#allocation5 + $0x50] sm:$0xf0]  ;;  %v2468_v17 = vld [vmem:[#allocation5 + $0x98] sm:$0xf]  ;;  %v2640_v18 = vld [vmem:[#allocation5 + $0xa0] sm:$0xf0] }
  0x36   : > { %v2469_v19 = vor.u32 %v2640_v18, %v2468_v17  ;;  %v2425_v20 = vor.u32 %v2630_v16, %v2424_v15  ;;  %v2412_v21 = vld [vmem:[#allocation5 + $0x30] sm:$0xf]  ;;  %v2627_v22 = vld [vmem:[#allocation5 + $0x38] sm:$0xf0]  ;;  %v2456_v23 = vld [vmem:[#allocation5 + $0x80] sm:$0xf] }
  0x37   : > { %468 = vmatpush.bf16.msra.mxu2 %v2481_v13  ;;  %v2637_v24 = vld [vmem:[#allocation5 + $0x88] sm:$0xf0]  ;;  %v2413_v26 = vor.u32 %v2627_v22, %v2412_v21  ;;  %v2400_v27 = vld [vmem:[#allocation5 + $0x18] sm:$0xf]  ;;  %v2624_v28 = vld [vmem:[#allocation5 + $0x20] sm:$0xf0] }
  0x38   : > { %431 = vmatpush.bf16.msra.mxu1 %v2461_v5  ;;  %v2457_v25 = vor.u32 %v2637_v24, %v2456_v23  ;;  %v2444_v29 = vld [vmem:[#allocation5 + $0x68] sm:$0xf]  ;;  %v2634_v30 = vld [vmem:[#allocation5 + $0x70] sm:$0xf0]  ;;  %v2401_v32 = vor.u32 %v2624_v28, %v2400_v27  ;;  %v2388_v33 = vld [vmem:[#allocation5] sm:$0xf] }
  0x39   : > { %v2445_v31 = vor.u32 %v2634_v30, %v2444_v29  ;;  %v2621_v34 = vld [vmem:[#allocation5 + $0x8] sm:$0xf0]  ;;  %v2432_v35 = vld [vmem:[#allocation5 + $0x50] sm:$0xf]  ;;  %v2631_v36 = vld [vmem:[#allocation5 + $0x58] sm:$0xf0] }
  0x3a   : > { %v2641_v37 = vld [vmem:[#allocation5 + $0xac] sm:$0xf]  ;;  %v2474_v38 = vld [vmem:[#allocation5 + $0xb4] sm:$0xf0]  ;;  %v2433_v39 = vor.u32 %v2631_v36, %v2432_v35  ;;  %v2389_v40 = vor.u32 %v2621_v34, %v2388_v33  ;;  %v2628_v43 = vld [vmem:[#allocation5 + $0x40] sm:$0xf0] }
  0x3b   : > { %469 = vmatpush.bf16.msra.mxu2 %v2469_v19  ;;  %v2477_v41 = vor.u32 %v2641_v37, %v2474_v38  ;;  %v2420_v42 = vld [vmem:[#allocation5 + $0x38] sm:$0xf]  ;;  %v2638_v44 = vld [vmem:[#allocation5 + $0x94] sm:$0xf]  ;;  %v2462_v45 = vld [vmem:[#allocation5 + $0x9c] sm:$0xf0] }
  0x3c   : > { %432 = vmatpush.bf16.msra.mxu1 %v2449_v8  ;;  %v2421_v46 = vor.u32 %v2628_v43, %v2420_v42  ;;  %v2618_v47 = vld [vmem:[%s3323_s14] sm:$0xff]  ;;  %v2465_v48 = vor.u32 %v2638_v44, %v2462_v45  ;;  %v2625_v50 = vld [vmem:[#allocation5 + $0x28] sm:$0xf0]  ;;  %v2635_v51 = vld [vmem:[#allocation5 + $0x7c] sm:$0xf]  ;;  %s3183_s21 = smov 96  }
  0x3d   : > { %v2408_v49 = vld [vmem:[#allocation5 + $0x20] sm:$0xf]  ;;  %v2450_v52 = vld [vmem:[#allocation5 + $0x84] sm:$0xf0]  ;;  %v2622_v55 = vld [vmem:[#allocation5 + $0x10] sm:$0xf0] }
  0x3e   : > { %v2409_v53 = vor.u32 %v2625_v50, %v2408_v49  ;;  %v2396_v54 = vld [vmem:[#allocation5 + $0x8] sm:$0xf]  ;;  %v2453_v56 = vor.u32 %v2635_v51, %v2450_v52  ;;  %v2632_v58 = vld [vmem:[#allocation5 + $0x64] sm:$0xf]  ;;  %v2438_v59 = vld [vmem:[#allocation5 + $0x6c] sm:$0xf0] }
  0x3f   : > { %470 = vmatpush.bf16.msra.mxu2 %v2457_v25  ;;  %v2397_v57 = vor.u32 %v2622_v55, %v2396_v54  ;;  %v2441_v60 = vor.u32 %v2632_v58, %v2438_v59  ;;  %v2629_v61 = vld [vmem:[#allocation5 + $0x4c] sm:$0xf]  ;;  %v2426_v62 = vld [vmem:[#allocation5 + $0x54] sm:$0xf0]  ;;  %v2626_v0 = vld [vmem:[#allocation5 + $0x34] sm:$0xf] }
  0x40   : > { %433 = vmatpush.bf16.msra.mxu1 %v2437_v14  ;;  %v2429_v63 = vor.u32 %v2629_v61, %v2426_v62  ;;  %v2414_v1 = vld [vmem:[#allocation5 + $0x3c] sm:$0xf0]  ;;  %v2619_v2 = vld [vmem:[%s3323_s14 + $0x8] sm:$0xff]  ;;  %v2620_v7 = vld [vmem:[#allocation5 + $0x4] sm:$0xf]  ;;  %s3184_s26 = smov 64  }
  0x41   : > { %v2417_v3 = vor.u32 %v2626_v0, %v2414_v1  ;;  %v2623_v4 = vld [vmem:[#allocation5 + $0x1c] sm:$0xf]  ;;  %v2402_v5 = vld [vmem:[#allocation5 + $0x24] sm:$0xf0]  ;;  %v2390_v8 = vld [vmem:[#allocation5 + $0xc] sm:$0xf0] }
  0x42   : > { %v2405_v6 = vor.u32 %v2623_v4, %v2402_v5  ;;  %v2393_v9 = vor.u32 %v2620_v7, %v2390_v8  ;;  %vm489_vm0 = vcmask 130048   ;;  %s3185_s10 = smov 112   ;;  %s3186_s11 = smov 80   ;;  %vm1308_vm1 = vcmask 261120  }
  0x43   : > { %471 = vmatpush.bf16.msra.mxu2 %v2445_v31  ;;  %s3187_s6 = smov 48   ;;  %s3188_s7 = smov 16   ;;  %vm1311_vm2 = vcmask 392192   ;;  %vm1314_vm3 = vcmask 523264   ;;  %vm1317_vm4 = vcmask 654336   ;;  %vm1320_vm5 = vcmask 785408  }
  0x44   : > { %434 = vmatpush.bf16.msra.mxu1 %v2425_v20  ;;  %s3189_s8 = smov 32   ;;  %vm1323_vm6 = vcmask 916480   ;;  %s251_s25 = scalar_lea.vmem [#allocation8], %s2374_s5 }
  0x45   : > { %s2653_s28 = sshll.u32 %s3237_s19, 4  ;;  %s2269_s14 = sshll.u32 %s251_s25, 4  ;;  %s2270_s14 = int_to_ptr.vmem [resolvable:$true] %s2269_s14 }
  0x46   : > { %s2268_s13 = scalar_lea.hbm %s4080_s4, %s2653_s28 }
  0x47   : > { %472 = vmatpush.bf16.msra.mxu2 %v2433_v39 }
  0x48   : > { %435 = vmatpush.bf16.msra.mxu1 %v2413_v26 }
  0x4b   : > { %473 = vmatpush.bf16.msra.mxu2 %v2421_v46 }
  0x4c   : > { %436 = vmatpush.bf16.msra.mxu1 %v2401_v32 }
  0x4f   : > { %474 = vmatpush.bf16.msra.mxu2 %v2409_v53 }
  0x50   : > { %437 = vmatpush.bf16.msra.mxu1 %v2389_v40 }
  0x53   : > { %438 = vmatmul.bf16.vlgmr.msra.gmra.mxu1 %v2618_v47  ;;  %475 = vmatpush.bf16.msra.mxu2 %v2397_v57 }
  0x54   : > { %449 = vmatpush.bf16.msrb.mxu1 %v2477_v41 }
  0x56   : > { %476 = vmatmul.bf16.vlgmr.msra.gmra.mxu2 %v2618_v47 }
  0x58   : > { %450 = vmatpush.bf16.msrb.mxu1 %v2465_v48 }
  0x5c   : > { %451 = vmatpush.bf16.msrb.mxu1 %v2453_v56 }
  0x60   : > { %452 = vmatpush.bf16.msrb.mxu1 %v2441_v60 }
  0x63   : > { %443 = vmatmul.bf16.gmra.mxu1 %v2619_v2 }
  0x64   : > { %453 = vmatpush.bf16.msrb.mxu1 %v2429_v63 }
  0x66   : > { %481 = vmatmul.bf16.gmra.mxu2 %v2619_v2 }
  0x68   : > { %454 = vmatpush.bf16.msrb.mxu1 %v2417_v3 }
  0x6c   : > { %455 = vmatpush.bf16.msrb.mxu1 %v2405_v6 }
  0x70   : > { %456 = vmatpush.bf16.msrb.mxu1 %v2393_v9 }
  0x73   : > { %457 = vmatmul.bf16.vlgmr.msrb.gmra.mxu1 %v2618_v47 }
  0x83   : > { %462 = vmatmul.bf16.gmra.mxu1 %v2619_v2 }
  0xd0   : > { %v439_v10 = vpop.f32.mrf.mxu1 }
  0xd1   : > { %v3335_v11 = vmul.f32 0.25, %v439_v10 }
  0xd3   : > { %674 = vrot.lane.b32.xlu1 %v3335_v11, %s3183_s21 }
  0xd8   : > { %v441_v12 = vpop.f32.mrf.mxu1 }
  0xd9   : > { %v3339_v13 = vmul.f32 0.25, %v441_v12  ;;  %v477_v17 = vpop.f32.mrf.mxu2 }
  0xdb   : > { %676 = vrot.lane.b32.xlu1 %v3339_v13, %s3183_s21 }
  0xe0   : > { %v3343_v14 = vpop.f32.mrf.mxu1 }
  0xe1   : > { %v479_v19 = vpop.f32.mrf.mxu2 }
  0xe2   : > { %v3371_v20 = vpack.i.bf16 %v477_v17, %v479_v19 }
  0xe8   : > { %v3345_v15 = vpop.f32.mrf.mxu1 }
  0xe9   : > { %v3467_v12 = vmul.f32 0.25, %v3345_v15 }
  0xf0   : > { %v3347_v16 = vpop.f32.mrf.mxu1 }
  0xf1   : > { %870 = vrot.lane.b32.xlu2 %v3347_v16, %s3184_s26 }
  0xf8   : > { %v3351_v18 = vpop.f32.mrf.mxu1 }
  0xf9   : > { %578 = vrot.lane.b32.xlu2 %v3339_v13, %s3185_s10  ;;  %872 = vrot.lane.b32.xlu1 %v3351_v18, %s3184_s26 }
  0xfa   : > { %680 = vrot.lane.b32.xlu0 %v3351_v18, %s3183_s21  ;;  %2482 = vmatpush.xpose.msk.msra.mxu3 %vm489_vm0, %v3351_v18 }
  0xfe   : > { %2483 = vmatpush.xpose.msk.msra.mxu3 %vm489_vm0, %v3347_v16 }
 0x100   : > { %v3415_v44 = vpop.f32.mrf.mxu1 }
 0x101   : > { %2484 = vmatmul.msk.f32.vlgmr.msra.gmra.mxu3 %vm489_vm0, %v3335_v11  ;;  %770 = vrot.lane.b32.xlu2 %v3335_v11, %s3186_s11 }
 0x102   : > { %563 = vmatpush.msrb.mxu3 %v479_v19  ;;  %868 = vrot.lane.b32.xlu1 %v3339_v13, %s3184_s26 }
 0x103   : > { %678 = vrot.lane.b32.xlu0 %v3347_v16, %s3183_s21 }
 0x104   : > { %564 = vmatpush.msrb.mxu3 %v477_v17 }
 0x108   : > { %v3421_v45 = vpop.f32.mrf.mxu1 }
 0x109   : > { %2485 = vmatmul.msk.f32.gmra.mxu3 %vm489_vm0, %v3339_v13  ;;  %772 = vrot.lane.b32.xlu2 %v3339_v13, %s3186_s11 }
 0x10a   : > { %576 = vrot.lane.b32.xlu1 %v3335_v11, %s3185_s10 }
 0x10b   : > { %2747 = vrot.lane.b32.xlu0 %v3371_v20, %s3183_s21 }
 0x111   : > { %776 = vrot.lane.b32.xlu2 %v3351_v18, %s3186_s11 }
 0x112   : > { %774 = vrot.lane.b32.xlu1 %v3347_v16, %s3186_s11 }
 0x113   : > { %866 = vrot.lane.b32.xlu0 %v3335_v11, %s3184_s26 }
 0x11a   : > { %582 = vrot.lane.b32.xlu1 %v3351_v18, %s3185_s10 }
 0x11b   : > { %580 = vrot.lane.b32.xlu0 %v3347_v16, %s3185_s10 }
 0x145   : > { %v675_v23 = vpop.permute.xlu1 %674 }
 0x14b   : > { %v871_v21 = vpop.permute.xlu2 %870 }
 0x14d   : > { %v677_v25 = vpop.permute.xlu1 %676 }
 0x153   : > { %v3391_v22 = vpop.permute.xlu2 %578 }
 0x15b   : > { %v771_v24 = vpop.permute.xlu2 %770 }
 0x163   : > { %v773_v26 = vpop.permute.xlu2 %772 }
 0x16b   : > { %v777_v27 = vpop.permute.xlu2 %776  ;;  %v873_v28 = vpop.permute.xlu1 %872 }
 0x16c   : > { %v681_v29 = vpop.permute.xlu0 %680  ;;  %2500 = vmatpush.xpose.msk.msrb.mxu2 %vm489_vm0, %v777_v27 }
 0x16d   : > { %2494 = vmatpush.xpose.msk.msra.mxu0 %vm489_vm0, %v681_v29 }
 0x174   : > { %v3395_v30 = vpop.permute.xlu1 %868 }
 0x175   : > { %v679_v31 = vpop.permute.xlu0 %678 }
 0x176   : > { %2495 = vmatpush.xpose.msk.msra.mxu0 %vm489_vm0, %v679_v31 }
 0x179   : > { %2496 = vmatmul.msk.f32.vlgmr.msra.gmra.mxu0 %vm489_vm0, %v675_v23 }
 0x17c   : > { %v577_v32 = vpop.permute.xlu1 %576 }
 0x17d   : > { %v2748_v33 = vpop.permute.xlu0 %2747 }
 0x17e   : > { %v2749_v34 = vunpack.i.l.bf16 %v2748_v33  ;;  %v2750_v35 = vunpack.i.h.bf16 %v2748_v33 }
 0x180   : > { %757 = vmatpush.msrb.mxu0 %v2749_v34 }
 0x181   : > { %2497 = vmatmul.msk.f32.gmra.mxu0 %vm489_vm0, %v677_v25 }
 0x182   : > { %758 = vmatpush.msrb.mxu0 %v2750_v35 }
 0x184   : > { %2506 = vmatpush.xpose.msk.msra.mxu0 %vm489_vm0, %v873_v28  ;;  %v775_v36 = vpop.permute.xlu1 %774  ;;  %v519_v37 = vpop.f32.mrf.mxu3 }
 0x185   : > { %2501 = vmatpush.xpose.msk.msrb.mxu2 %vm489_vm0, %v775_v36  ;;  %v3402_v38 = vpop.permute.xlu0 %866  ;;  %v525_v39 = vsel %vm489_vm0, %v519_v37, -inf }
 0x186   : > { %526 = vmax.xlane.f32.xlu0 %v525_v39 }
 0x188   : > { %2507 = vmatpush.xpose.msk.msra.mxu0 %vm489_vm0, %v871_v21  ;;  %2502 = vmatmul.msk.f32.vlgmr.msrb.gmra.mxu2 %vm489_vm0, %v771_v24 }
 0x18c   : > { %v583_v40 = vpop.permute.xlu1 %582  ;;  %v522_v41 = vpop.f32.mrf.mxu3 }
 0x18d   : > { %2488 = vmatpush.xpose.msk.msra.mxu3 %vm489_vm0, %v583_v40  ;;  %v528_v42 = vsel %vm489_vm0, %v522_v41, -inf  ;;  %v581_v43 = vpop.permute.xlu0 %580 }
 0x18e   : > { %529 = vmax.xlane.f32.xlu1 %v528_v42 }
 0x190   : > { %2503 = vmatmul.msk.f32.gmra.mxu2 %vm489_vm0, %v773_v26  ;;  %v3532_v26 = vpop.f32.mrf.mxu2 }
 0x191   : > { %2489 = vmatpush.xpose.msk.msra.mxu3 %vm489_vm0, %v581_v43 }
 0x198   : > { %v3538_v28 = vpop.f32.mrf.mxu2 }
 0x19a   : > { %966 = vrot.lane.b32.xlu0 %v3347_v16, %s3187_s6 }
 0x1a2   : > { %1154 = vrot.lane.b32.xlu0 %v3335_v11, %s3188_s7 }
 0x1a7   : > { %1160 = vrot.lane.b32.xlu1 %v3351_v18, %s3188_s7 }
 0x1aa   : > { %1062 = vrot.lane.b32.xlu0 %v3347_v16, %s3189_s8 }
 0x1b2   : > { %1420 = vrot.lane.b32.xlu0 %v3421_v45, %s3185_s10 }
 0x1f6   : > { %v707_v46 = vpop.f32.mrf.mxu0 }
 0x1f7   : > { %v713_v47 = vsel %vm489_vm0, %v707_v46, -inf }
 0x1f8   : > { %714 = vmax.xlane.f32.xlu2 %v713_v47 }
 0x1f9   : > { %v527_v48 = vpop.xlane.xlu0 %526 }
 0x1fa   : > { %v531_v49 = vsub.f32 %v519_v37, %v527_v48 }
 0x1fc   : > { %v533_v50 = vmul.f32 1.442695, %v531_v49 }
 0x1fe   : > { %v710_v51 = vpop.f32.mrf.mxu0  ;;  %2887 = vpow2.f32 %v533_v50 }
 0x1ff   : > { %v716_v52 = vsel %vm489_vm0, %v710_v51, -inf }
 0x200   : > { %717 = vmax.xlane.f32.xlu2 %v716_v52 }
 0x201   : > { %v530_v53 = vpop.xlane.xlu1 %529 }
 0x202   : > { %v532_v54 = vsub.f32 %v522_v41, %v530_v53 }
 0x204   : > { %v2888_v55 = vpop.eup %2887  ;;  %v535_v56 = vmul.f32 1.442695, %v532_v54 }
 0x205   : > { %2486 = vmatmul.msk.f32.vlgmr.msrb.gmra.mxu3 %vm489_vm0, %v2888_v55  ;;  %v537_v62 = vsel %vm489_vm0, %v2888_v55, 0.0 }
 0x206   : > { %2889 = vpow2.f32 %v535_v56 }
 0x20b   : > { %v3548_v33 = vpop.f32.mrf.mxu2 }
 0x20c   : > { %v2890_v57 = vpop.eup %2889  ;;  %v967_v8 = vpop.permute.xlu0 %966  ;;  %v809_v34 = vsel %vm489_vm0, %v3548_v33, -inf }
 0x20d   : > { %2487 = vmatmul.msk.f32.gmra.mxu3 %vm489_vm0, %v2890_v57  ;;  %v540_v58 = vsel %vm489_vm0, %v2890_v57, 0.0 }
 0x20e   : > { %541 = vadd.xlane.f32.xlu0 %v540_v58 }
 0x213   : > { %v3568_v48 = vpop.f32.mrf.mxu2 }
 0x214   : > { %v812_v49 = vsel %vm489_vm0, %v3568_v48, -inf }
 0x215   : > { %2490 = vmatmul.msk.f32.vlgmr.msra.gmra.mxu3 %vm489_vm0, %v577_v32 }
 0x218   : > { %2752 = vrot.lane.b32.xlu2 %v3371_v20, %s3184_s26 }
 0x21d   : > { %2491 = vmatmul.msk.f32.gmra.mxu3 %vm489_vm0, %v3391_v22  ;;  %v3488_v22 = vpop.permute.xlu0 %1154 }
 0x220   : > { %968 = vrot.lane.b32.xlu2 %v3351_v18, %s3187_s6 }
 0x228   : > { %962 = vrot.lane.b32.xlu2 %v3335_v11, %s3187_s6 }
 0x230   : > { %964 = vrot.lane.b32.xlu2 %v3339_v13, %s3187_s6 }
 0x238   : > { %1158 = vrot.lane.b32.xlu2 %v3347_v16, %s3188_s7 }
 0x240   : > { %1064 = vrot.lane.b32.xlu2 %v3351_v18, %s3189_s8  ;;  %v3478_v18 = vmul.f32 0.25, %v3343_v14  ;;  %v1063_v14 = vpop.permute.xlu0 %1062 }
 0x248   : > { %1156 = vrot.lane.b32.xlu2 %v3339_v13, %s3188_s7 }
 0x26b   : > { %v715_v59 = vpop.xlane.xlu2 %714 }
 0x26c   : > { %v719_v60 = vsub.f32 %v707_v46, %v715_v59  ;;  %v3564_v46 = vpop.permute.xlu0 %1420 }
 0x26e   : > { %v721_v61 = vmul.f32 1.442695, %v719_v60 }
 0x270   : > { %2891 = vpow2.f32 %v721_v61 }
 0x271   : > { %538 = vadd.xlane.f32.xlu2 %v537_v62 }
 0x273   : > { %v718_v63 = vpop.xlane.xlu2 %717 }
 0x274   : > { %v720_v0 = vsub.f32 %v710_v51, %v718_v63 }
 0x276   : > { %v3448_v1 = vpop.eup %2891  ;;  %v723_v2 = vmul.f32 1.442695, %v720_v0 }
 0x277   : > { %2498 = vmatmul.msk.f32.vlgmr.msrb.gmra.mxu0 %vm489_vm0, %v3448_v1 }
 0x278   : > { %2893 = vpow2.f32 %v723_v2 }
 0x27b   : > { %v2753_v3 = vpop.permute.xlu2 %2752 }
 0x27c   : > { %v2754_v4 = vunpack.i.l.bf16 %v2753_v3  ;;  %v2755_v6 = vunpack.i.h.bf16 %v2753_v3 }
 0x27e   : > { %v3452_v5 = vpop.eup %2893  ;;  %949 = vmatpush.msra.mxu1 %v2754_v4  ;;  %2665 = vmatpush.msra.mxu2 %v2754_v4  ;;  %v1161_v4 = vpop.permute.xlu1 %1160 }
 0x27f   : > { %2499 = vmatmul.msk.f32.gmra.mxu0 %vm489_vm0, %v3452_v5 }
 0x280   : > { %950 = vmatpush.msra.mxu1 %v2755_v6  ;;  %2666 = vmatpush.msra.mxu2 %v2755_v6 }
 0x281   : > { %v3576_v51 = vpop.xlane.xlu0 %541 }
 0x283   : > { %v969_v7 = vpop.permute.xlu2 %968 }
 0x284   : > { %2512 = vmatpush.xpose.msk.msrb.mxu2 %vm489_vm0, %v969_v7 }
 0x287   : > { %2508 = vmatmul.msk.f32.vlgmr.msra.gmra.mxu0 %vm489_vm0, %v3402_v38 }
 0x288   : > { %2513 = vmatpush.xpose.msk.msrb.mxu2 %vm489_vm0, %v967_v8  ;;  %v3462_v9 = vpop.f32.mrf.mxu3 }
 0x289   : > { %1418 = vrot.lane.b32.xlu2 %v3415_v44, %s3185_s10 }
 0x28b   : > { %v3464_v10 = vpop.permute.xlu2 %962 }
 0x28f   : > { %2509 = vmatmul.msk.f32.gmra.mxu0 %vm489_vm0, %v3395_v30 }
 0x290   : > { %v3473_v16 = vpop.f32.mrf.mxu3 }
 0x291   : > { %1416 = vrot.lane.b32.xlu2 %v3467_v12, %s3185_s10 }
 0x293   : > { %v3475_v17 = vpop.permute.xlu2 %964 }
 0x298   : > { %v3482_v19 = vpop.f32.mrf.mxu3 }
 0x299   : > { %1608 = vrot.lane.b32.xlu2 %v3478_v18, %s3186_s11  ;;  %v615_v21 = vsel %vm489_vm0, %v3482_v19, -inf }
 0x29a   : > { %616 = vmax.xlane.f32.xlu0 %v615_v21  ;;  %v3625_v21 = vpack.i.bf16 %v3532_v26, %v3538_v28 }
 0x29b   : > { %v3484_v15 = vpop.permute.xlu2 %1158 }
 0x2a0   : > { %v3560_v42 = vpop.f32.mrf.mxu3 }
 0x2a1   : > { %1610 = vrot.lane.b32.xlu2 %v3467_v12, %s3186_s11  ;;  %v618_v43 = vsel %vm489_vm0, %v3560_v42, -inf }
 0x2a3   : > { %v1065_v23 = vpop.permute.xlu2 %1064 }
 0x2a4   : > { %2518 = vmatpush.xpose.msk.msrb.mxu0 %vm489_vm0, %v1065_v23 }
 0x2a8   : > { %2519 = vmatpush.xpose.msk.msrb.mxu0 %vm489_vm0, %v1063_v14 }
 0x2a9   : > { %1804 = vrot.lane.b32.xlu2 %v3415_v44, %s3187_s6 }
 0x2ab   : > { %v3524_v24 = vpop.permute.xlu2 %1156 }
 0x2ac   : > { %2530 = vmatpush.xpose.msk.msra.mxu0 %vm489_vm0, %v3421_v45 }
 0x2ae   : > { %1414 = vrot.lane.b32.xlu0 %v3478_v18, %s3185_s10 }
 0x2b0   : > { %2531 = vmatpush.xpose.msk.msra.mxu0 %vm489_vm0, %v3415_v44 }
 0x2b1   : > { %1710 = vrot.lane.b32.xlu2 %v3421_v45, %s3184_s26 }
 0x2b6   : > { %1614 = vrot.lane.b32.xlu0 %v3421_v45, %s3186_s11 }
 0x2b9   : > { %1998 = vrot.lane.b32.xlu2 %v3421_v45, %s3188_s7 }
 0x2be   : > { %1518 = vrot.lane.b32.xlu0 %v3421_v45, %s3183_s21 }
 0x2c1   : > { %1992 = vrot.lane.b32.xlu2 %v3478_v18, %s3188_s7 }
 0x2c6   : > { %1806 = vrot.lane.b32.xlu0 %v3421_v45, %s3187_s6 }
 0x2c9   : > { %1900 = vrot.lane.b32.xlu2 %v3415_v44, %s3189_s8 }
 0x2ce   : > { %1800 = vrot.lane.b32.xlu0 %v3478_v18, %s3187_s6 }
 0x2d1   : > { %1898 = vrot.lane.b32.xlu2 %v3467_v12, %s3189_s8 }
 0x2d6   : > { %1708 = vrot.lane.b32.xlu0 %v3415_v44, %s3184_s26 }
 0x2d9   : > { %2757 = vrot.lane.b32.xlu2 %v3371_v20, %s3185_s10 }
 0x2de   : > { %1704 = vrot.lane.b32.xlu0 %v3478_v18, %s3184_s26 }
 0x2e4   : > { %v3528_v25 = vpop.xlane.xlu2 %538 }
 0x2e6   : > { %1706 = vrot.lane.b32.xlu0 %v3467_v12, %s3184_s26 }
 0x2ec   : > { %v3534_v27 = vpop.permute.xlu2 %1418 }
 0x2ee   : > { %1994 = vrot.lane.b32.xlu0 %v3467_v12, %s3188_s7 }
 0x2f4   : > { %v3540_v29 = vpop.f32.mrf.mxu0  ;;  %v3542_v30 = vpop.permute.xlu2 %1416 }
 0x2fc   : > { %v3544_v31 = vpop.f32.mrf.mxu0  ;;  %v3546_v32 = vpop.permute.xlu2 %1608 }
 0x302   : > { %810 = vmax.xlane.f32.xlu2 %v809_v34 }
 0x304   : > { %v899_v35 = vpop.f32.mrf.mxu0  ;;  %v3552_v36 = vpop.permute.xlu2 %1610 }
 0x305   : > { %v905_v37 = vsel %vm489_vm0, %v899_v35, -inf }
 0x30a   : > { %906 = vmax.xlane.f32.xlu2 %v905_v37 }
 0x30c   : > { %v902_v38 = vpop.f32.mrf.mxu0  ;;  %v3555_v39 = vpop.permute.xlu2 %1804 }
 0x30d   : > { %v908_v40 = vsel %vm489_vm0, %v902_v38, -inf  ;;  %v617_v53 = vpop.xlane.xlu0 %616 }
 0x30e   : > { %909 = vmax.xlane.f32.xlu1 %v908_v40  ;;  %v621_v54 = vsub.f32 %v3482_v19, %v617_v53 }
 0x310   : > { %v623_v57 = vmul.f32 1.442695, %v621_v54 }
 0x312   : > { %2895 = vpow2.f32 %v623_v57 }
 0x314   : > { %v3558_v41 = vpop.permute.xlu2 %1710 }
 0x318   : > { %619 = vmax.xlane.f32.xlu0 %v618_v43 }
 0x31c   : > { %v3566_v47 = vpop.permute.xlu2 %1998 }
 0x320   : > { %813 = vmax.xlane.f32.xlu0 %v812_v49  ;;  %v3587_v56 = vpop.permute.xlu0 %1414 }
 0x322   : > { %2772 = vrot.lane.b32.xlu2 %v3371_v20, %s3188_s7 }
 0x324   : > { %v3574_v50 = vpop.permute.xlu2 %1992 }
 0x327   : > { %1058 = vrot.lane.b32.xlu1 %v3335_v11, %s3189_s8 }
 0x328   : > { %v1615_v59 = vpop.permute.xlu0 %1614 }
 0x32a   : > { %2792 = vrot.lane.b32.xlu2 %v3625_v21, %s3183_s21 }
 0x32c   : > { %v3580_v52 = vpop.permute.xlu2 %1900 }
 0x32f   : > { %1060 = vrot.lane.b32.xlu1 %v3339_v13, %s3189_s8  ;;  %v3595_v13 = vpop.eup %2895 }
 0x330   : > { %v1519_v61 = vpop.permute.xlu0 %1518 }
 0x334   : > { %v3585_v55 = vpop.permute.xlu2 %1898  ;;  %2767 = vrot.lane.b32.xlu0 %v3371_v20, %s3187_s6 }
 0x337   : > { %1612 = vrot.lane.b32.xlu1 %v3415_v44, %s3186_s11 }
 0x338   : > { %v1807_v62 = vpop.permute.xlu0 %1806 }
 0x33c   : > { %v2758_v11 = vpop.permute.xlu2 %2757  ;;  %2787 = vrot.lane.b32.xlu0 %v3625_v21, %s3186_s11 }
 0x33d   : > { %v2759_v58 = vunpack.i.l.bf16 %v2758_v11  ;;  %v2760_v60 = vunpack.i.h.bf16 %v2758_v11 }
 0x33f   : > { %1516 = vrot.lane.b32.xlu1 %v3415_v44, %s3183_s21  ;;  %661 = vmatpush.msrb.mxu3 %v2759_v58 }
 0x340   : > { %v3605_v63 = vpop.permute.xlu0 %1800 }
 0x341   : > { %662 = vmatpush.msrb.mxu3 %v2760_v60 }
 0x342   : > { %2492 = vmatmul.msk.f32.vlgmr.msrb.gmra.mxu3 %vm489_vm0, %v3595_v13 }
 0x347   : > { %1512 = vrot.lane.b32.xlu1 %v3478_v18, %s3183_s21 }
 0x348   : > { %v1709_v0 = vpop.permute.xlu0 %1708 }
 0x34f   : > { %1514 = vrot.lane.b32.xlu1 %v3467_v12, %s3183_s21 }
 0x350   : > { %v3613_v2 = vpop.permute.xlu0 %1704 }
 0x357   : > { %1802 = vrot.lane.b32.xlu1 %v3467_v12, %s3187_s6 }
 0x358   : > { %v3619_v6 = vpop.permute.xlu0 %1706 }
 0x35f   : > { %1996 = vrot.lane.b32.xlu1 %v3415_v44, %s3188_s7 }
 0x360   : > { %v3627_v14 = vpop.permute.xlu0 %1994 }
 0x367   : > { %1902 = vrot.lane.b32.xlu1 %v3421_v45, %s3189_s8 }
 0x36f   : > { %1896 = vrot.lane.b32.xlu1 %v3478_v18, %s3189_s8 }
 0x375   : > { %v3615_v3 = vpop.xlane.xlu2 %810 }
 0x377   : > { %2762 = vrot.lane.b32.xlu1 %v3371_v20, %s3186_s11 }
 0x37d   : > { %v907_v7 = vpop.xlane.xlu2 %906 }
 0x37e   : > { %v911_v8 = vsub.f32 %v899_v35, %v907_v7 }
 0x37f   : > { %2777 = vrot.lane.b32.xlu1 %v3371_v20, %s3189_s8 }
 0x380   : > { %v913_v44 = vmul.f32 1.442695, %v911_v8 }
 0x381   : > { %v910_v45 = vpop.xlane.xlu1 %909 }
 0x382   : > { %2897 = vpow2.f32 %v913_v44  ;;  %v912_v19 = vsub.f32 %v902_v38, %v910_v45 }
 0x384   : > { %v915_v23 = vmul.f32 1.442695, %v912_v19 }
 0x385   : > { %v2773_v54 = vpop.permute.xlu2 %2772 }
 0x386   : > { %2899 = vpow2.f32 %v915_v23  ;;  %v2775_v11 = vunpack.i.h.bf16 %v2773_v54 }
 0x387   : > { %2782 = vrot.lane.b32.xlu1 %v3625_v21, %s3185_s10 }
 0x388   : > { %v3631_v34 = vpop.eup %2897 }
 0x389   : > { %2510 = vmatmul.msk.f32.vlgmr.msra.gmra.mxu1 %vm489_vm0, %v3631_v34 }
 0x38b   : > { %v620_v35 = vpop.xlane.xlu0 %619 }
 0x38c   : > { %v3635_v20 = vpop.eup %2899  ;;  %v622_v37 = vsub.f32 %v3560_v42, %v620_v35 }
 0x38d   : > { %2511 = vmatmul.msk.f32.vlgmr.msra.gmra.mxu2 %vm489_vm0, %v3635_v20 }
 0x38e   : > { %2524 = vmatpush.xpose.msk.msra.mxu2 %vm489_vm0, %v1161_v4  ;;  %v625_v38 = vmul.f32 1.442695, %v622_v37 }
 0x38f   : > { %2797 = vrot.lane.b32.xlu1 %v3625_v21, %s3187_s6 }
 0x390   : > { %2901 = vpow2.f32 %v625_v38 }
 0x392   : > { %2525 = vmatpush.xpose.msk.msra.mxu2 %vm489_vm0, %v3484_v15 }
 0x395   : > { %2514 = vmatmul.msk.f32.vlgmr.msrb.gmra.mxu2 %vm489_vm0, %v3464_v10 }
 0x396   : > { %2536 = vmatpush.xpose.msk.msrb.mxu2 %vm489_vm0, %v3564_v46  ;;  %v3651_v40 = vpop.eup %2901 }
 0x397   : > { %2802 = vrot.lane.b32.xlu1 %v3625_v21, %s3184_s26  ;;  %2493 = vmatmul.msk.f32.gmra.mxu3 %vm489_vm0, %v3651_v40 }
 0x399   : > { %v1059_v42 = vpop.permute.xlu1 %1058 }
 0x39a   : > { %2537 = vmatpush.xpose.msk.msrb.mxu2 %vm489_vm0, %v3534_v27  ;;  %2520 = vmatmul.msk.f32.vlgmr.msrb.gmra.mxu0 %vm489_vm0, %v1059_v42 }
 0x39b   : > { %2542 = vmatpush.xpose.msk.msrb.mxu0 %vm489_vm0, %v1519_v61 }
 0x39d   : > { %2515 = vmatmul.msk.f32.gmra.mxu2 %vm489_vm0, %v3475_v17 }
 0x3a1   : > { %v1061_v10 = vpop.permute.xlu1 %1060 }
 0x3a2   : > { %2521 = vmatmul.msk.f32.gmra.mxu0 %vm489_vm0, %v1061_v10 }
 0x3a5   : > { %2526 = vmatmul.msk.f32.vlgmr.msra.gmra.mxu2 %vm489_vm0, %v3488_v22 }
 0x3a6   : > { %2548 = vmatpush.xpose.msk.msra.mxu2 %vm489_vm0, %v1615_v59 }
 0x3a9   : > { %v1613_v15 = vpop.permute.xlu1 %1612 }
 0x3aa   : > { %2532 = vmatmul.msk.f32.vlgmr.msra.gmra.mxu0 %vm489_vm0, %v3478_v18  ;;  %2549 = vmatpush.xpose.msk.msra.mxu2 %vm489_vm0, %v1613_v15 }
 0x3ad   : > { %2527 = vmatmul.msk.f32.gmra.mxu2 %vm489_vm0, %v3524_v24 }
 0x3b1   : > { %v1517_v27 = vpop.permute.xlu1 %1516 }
 0x3b2   : > { %2533 = vmatmul.msk.f32.gmra.mxu0 %vm489_vm0, %v3467_v12  ;;  %v627_v12 = vsel %vm489_vm0, %v3595_v13, 0.0 }
 0x3b3   : > { %2543 = vmatpush.xpose.msk.msrb.mxu0 %vm489_vm0, %v1517_v27 }
 0x3b5   : > { %2538 = vmatmul.msk.f32.vlgmr.msrb.gmra.mxu2 %vm489_vm0, %v3587_v56 }
 0x3b6   : > { %2560 = vmatpush.xpose.msk.msrb.mxu2 %vm489_vm0, %v1807_v62 }
 0x3b7   : > { %2554 = vmatpush.xpose.msk.msra.mxu0 %vm489_vm0, %v3558_v41 }
 0x3b9   : > { %v1513_v17 = vpop.permute.xlu1 %1512 }
 0x3ba   : > { %2561 = vmatpush.xpose.msk.msrb.mxu2 %vm489_vm0, %v3555_v39  ;;  %2544 = vmatmul.msk.f32.vlgmr.msrb.gmra.mxu0 %vm489_vm0, %v1513_v17  ;;  %v814_v39 = vpop.xlane.xlu0 %813 }
 0x3bb   : > { %2555 = vmatpush.xpose.msk.msra.mxu0 %vm489_vm0, %v1709_v0  ;;  %v816_v43 = vsub.f32 %v3568_v48, %v814_v39 }
 0x3bd   : > { %2539 = vmatmul.msk.f32.gmra.mxu2 %vm489_vm0, %v3542_v30 }
 0x3c1   : > { %v1515_v18 = vpop.permute.xlu1 %1514  ;;  %628 = vadd.xlane.f32.xlu1 %v627_v12 }
 0x3c2   : > { %2545 = vmatmul.msk.f32.gmra.mxu0 %vm489_vm0, %v1515_v18  ;;  %v2768_v49 = vpop.permute.xlu0 %2767 }
 0x3c3   : > { %v2769_v56 = vunpack.i.l.bf16 %v2768_v49  ;;  %v2770_v48 = vunpack.i.h.bf16 %v2768_v49 }
 0x3c5   : > { %2550 = vmatmul.msk.f32.vlgmr.msra.gmra.mxu2 %vm489_vm0, %v3546_v32  ;;  %v815_v32 = vsub.f32 %v3548_v33, %v3615_v3 }
 0x3c6   : > { %2572 = vmatpush.xpose.msk.msra.mxu2 %vm489_vm0, %v3566_v47 }
 0x3c7   : > { %v817_v41 = vmul.f32 1.442695, %v815_v32 }
 0x3c9   : > { %v1803_v22 = vpop.permute.xlu1 %1802  ;;  %2903 = vpow2.f32 %v817_v41 }
 0x3ca   : > { %2556 = vmatmul.msk.f32.vlgmr.msra.gmra.mxu0 %vm489_vm0, %v3613_v2 }
 0x3cd   : > { %2551 = vmatmul.msk.f32.gmra.mxu2 %vm489_vm0, %v3552_v36 }
 0x3cf   : > { %v3718_v33 = vpop.eup %2903 }
 0x3d0   : > { %v821_v32 = vsel %vm489_vm0, %v3718_v33, 0.0 }
 0x3d1   : > { %v1997_v24 = vpop.permute.xlu1 %1996 }
 0x3d2   : > { %2557 = vmatmul.msk.f32.gmra.mxu0 %vm489_vm0, %v3619_v6  ;;  %2573 = vmatpush.xpose.msk.msra.mxu2 %vm489_vm0, %v1997_v24 }
 0x3d5   : > { %2562 = vmatmul.msk.f32.vlgmr.msrb.gmra.mxu2 %vm489_vm0, %v3605_v63 }
 0x3d9   : > { %v1903_v30 = vpop.permute.xlu1 %1902 }
 0x3da   : > { %2566 = vmatpush.xpose.msk.msrb.mxu0 %vm489_vm0, %v1903_v30 }
 0x3dd   : > { %2563 = vmatmul.msk.f32.gmra.mxu2 %vm489_vm0, %v1803_v22  ;;  %v728_v22 = vsel %vm489_vm0, %v3452_v5, 0.0 }
 0x3de   : > { %2567 = vmatpush.xpose.msk.msrb.mxu0 %vm489_vm0, %v3580_v52  ;;  %v819_v52 = vmul.f32 1.442695, %v816_v43  ;;  %v2793_v43 = vpop.permute.xlu2 %2792 }
 0x3e0   : > { %2905 = vpow2.f32 %v819_v52  ;;  %v630_v52 = vsel %vm489_vm0, %v3651_v40, 0.0 }
 0x3e1   : > { %v1897_v36 = vpop.permute.xlu1 %1896 }
 0x3e2   : > { %2568 = vmatmul.msk.f32.vlgmr.msrb.gmra.mxu0 %vm489_vm0, %v1897_v36 }
 0x3e5   : > { %2574 = vmatmul.msk.f32.vlgmr.msra.gmra.mxu2 %vm489_vm0, %v3574_v50  ;;  %v2774_v50 = vunpack.i.l.bf16 %v2773_v54 }
 0x3e6   : > { %v2906_v59 = vpop.eup %2905 }
 0x3e7   : > { %v824_v41 = vsel %vm489_vm0, %v2906_v59, 0.0 }
 0x3e9   : > { %v2763_v46 = vpop.permute.xlu1 %2762 }
 0x3ea   : > { %v2764_v47 = vunpack.i.l.bf16 %v2763_v46  ;;  %2569 = vmatmul.msk.f32.gmra.mxu0 %vm489_vm0, %v3585_v55  ;;  %v2765_v53 = vunpack.i.h.bf16 %v2763_v46 }
 0x3ec   : > { %853 = vmatpush.msra.mxu3 %v2764_v47  ;;  %v917_v47 = vsel %vm489_vm0, %v3631_v34, 0.0 }
 0x3ed   : > { %2575 = vmatmul.msk.f32.gmra.mxu2 %vm489_vm0, %v3627_v14 }
 0x3ee   : > { %854 = vmatpush.msra.mxu3 %v2765_v53 }
 0x3ef   : > { %2504 = vmatmul.msk.f32.vlgmr.msra.gmra.mxu3 %vm489_vm0, %v3718_v33 }
 0x3f0   : > { %1045 = vmatpush.msrb.mxu3 %v2769_v56 }
 0x3f1   : > { %v2778_v55 = vpop.permute.xlu1 %2777 }
 0x3f2   : > { %v2779_v57 = vunpack.i.l.bf16 %v2778_v55  ;;  %1046 = vmatpush.msrb.mxu3 %v2770_v48  ;;  %v2780_v58 = vunpack.i.h.bf16 %v2778_v55 }
 0x3f4   : > { %1237 = vmatpush.msra.mxu3 %v2774_v50  ;;  %1141 = vmatpush.msrb.mxu1 %v2779_v57  ;;  %v3815_v50 = vpop.permute.xlu0 %2787 }
 0x3f6   : > { %1238 = vmatpush.msra.mxu3 %v2775_v11  ;;  %1142 = vmatpush.msrb.mxu1 %v2780_v58  ;;  %v2794_v58 = vunpack.i.l.bf16 %v2793_v43 }
 0x3f7   : > { %2505 = vmatmul.msk.f32.gmra.mxu3 %vm489_vm0, %v2906_v59 }
 0x3f8   : > { %1401 = vmatpush.msra.mxu1 %v3538_v28 }
 0x3f9   : > { %v3800_v46 = vpop.permute.xlu1 %2782 }
 0x3fa   : > { %1402 = vmatpush.msra.mxu1 %v3532_v26 }
 0x401   : > { %v3811_v48 = vpop.permute.xlu1 %2797 }
 0x410   : > { %v3741_v2 = vpop.f32.mrf.mxu2 }
 0x417   : > { %v3725_v60 = vpop.f32.mrf.mxu0 }
 0x418   : > { %v1097_v13 = vsel %vm489_vm0, %v3725_v60, -inf  ;;  %v3747_v6 = vpop.f32.mrf.mxu2 }
 0x419   : > { %1098 = vmax.xlane.f32.xlu2 %v1097_v13  ;;  %v1001_v38 = vsel %vm489_vm0, %v3747_v6, -inf  ;;  %v920_v13 = vsel %vm489_vm0, %v3635_v20, 0.0 }
 0x41f   : > { %v3729_v61 = vpop.f32.mrf.mxu0 }
 0x420   : > { %v1100_v62 = vsel %vm489_vm0, %v3729_v61, -inf  ;;  %v3753_v44 = vpop.f32.mrf.mxu2 }
 0x421   : > { %1101 = vmax.xlane.f32.xlu2 %v1100_v62  ;;  %v1004_v23 = vsel %vm489_vm0, %v3753_v44, -inf  ;;  %v2803_v62 = vpop.permute.xlu1 %2802 }
 0x427   : > { %v3733_v63 = vpop.f32.mrf.mxu0 }
 0x428   : > { %v1363_v0 = vsel %vm489_vm0, %v3733_v63, -inf  ;;  %v3765_v37 = vpop.f32.mrf.mxu2 }
 0x429   : > { %1364 = vmax.xlane.f32.xlu0 %v1363_v0  ;;  %v1193_v17 = vsel %vm489_vm0, %v3765_v37, -inf }
 0x42f   : > { %v3737_v28 = vpop.f32.mrf.mxu0 }
 0x430   : > { %v1366_v26 = vsel %vm489_vm0, %v3737_v28, -inf  ;;  %v3775_v15 = vpop.f32.mrf.mxu2 }
 0x431   : > { %1367 = vmax.xlane.f32.xlu2 %v1366_v26  ;;  %v1196_v24 = vsel %vm489_vm0, %v3775_v15, -inf }
 0x437   : > { %v3743_v3 = vpop.f32.mrf.mxu0 }
 0x438   : > { %v1551_v4 = vsel %vm489_vm0, %v3743_v3, -inf  ;;  %v3783_v18 = vpop.f32.mrf.mxu2 }
 0x439   : > { %1552 = vmax.xlane.f32.xlu1 %v1551_v4  ;;  %v1453_v36 = vsel %vm489_vm0, %v3783_v18, -inf }
 0x43f   : > { %v3749_v7 = vpop.f32.mrf.mxu0 }
 0x440   : > { %v1554_v8 = vsel %vm489_vm0, %v3749_v7, -inf  ;;  %v3789_v30 = vpop.f32.mrf.mxu2 }
 0x441   : > { %1555 = vmax.xlane.f32.xlu2 %v1554_v8  ;;  %v1456_v5 = vsel %vm489_vm0, %v3789_v30, -inf }
 0x447   : > { %v3755_v45 = vpop.f32.mrf.mxu0 }
 0x448   : > { %v1743_v19 = vsel %vm489_vm0, %v3755_v45, -inf  ;;  %v3795_v39 = vpop.f32.mrf.mxu2 }
 0x449   : > { %1744 = vmax.xlane.f32.xlu1 %v1743_v19  ;;  %1005 = vmax.xlane.f32.xlu2 %v1004_v23  ;;  %v1647_v49 = vsel %vm489_vm0, %v3795_v39, -inf  ;;  %v3835_v23 = vpop.xlane.xlu1 %628 }
 0x44f   : > { %v3761_v14 = vpop.f32.mrf.mxu0 }
 0x450   : > { %v1746_v35 = vsel %vm489_vm0, %v3761_v14, -inf  ;;  %v3808_v53 = vpop.f32.mrf.mxu2 }
 0x451   : > { %1747 = vmax.xlane.f32.xlu0 %v1746_v35  ;;  %v1650_v34 = vsel %vm489_vm0, %v3808_v53, -inf }
 0x458   : > { %v3817_v55 = vpop.f32.mrf.mxu2 }
 0x459   : > { %1002 = vmax.xlane.f32.xlu0 %v1001_v38  ;;  %v2804_v38 = vunpack.i.l.bf16 %v2803_v62 }
 0x45f   : > { %v3769_v42 = vpop.f32.mrf.mxu0 }
 0x460   : > { %v1935_v10 = vsel %vm489_vm0, %v3769_v42, -inf }
 0x461   : > { %1936 = vmax.xlane.f32.xlu1 %v1935_v10  ;;  %2807 = vrot.lane.b32.xlu2 %v3625_v21, %s3188_s7 }
 0x467   : > { %v3777_v27 = vpop.f32.mrf.mxu0 }
 0x468   : > { %v1938_v12 = vsel %vm489_vm0, %v3777_v27, -inf }
 0x469   : > { %1194 = vmax.xlane.f32.xlu1 %v1193_v17  ;;  %1939 = vmax.xlane.f32.xlu0 %v1938_v12  ;;  %v2805_v17 = vunpack.i.h.bf16 %v2803_v62 }
 0x471   : > { %729 = vadd.xlane.f32.xlu1 %v728_v22  ;;  %1197 = vmax.xlane.f32.xlu0 %v1196_v24 }
 0x479   : > { %822 = vadd.xlane.f32.xlu1 %v821_v32  ;;  %1454 = vmax.xlane.f32.xlu0 %v1453_v36 }
 0x481   : > { %825 = vadd.xlane.f32.xlu1 %v824_v41  ;;  %1457 = vmax.xlane.f32.xlu0 %v1456_v5 }
 0x489   : > { %918 = vadd.xlane.f32.xlu1 %v917_v47  ;;  %1648 = vmax.xlane.f32.xlu0 %v1647_v49 }
 0x48a   : > { %631 = vadd.xlane.f32.xlu2 %v630_v52 }
 0x48c   : > { %v1099_v33 = vpop.xlane.xlu2 %1098 }
 0x48d   : > { %v1103_v54 = vsub.f32 %v3725_v60, %v1099_v33  ;;  %v2795_v60 = vunpack.i.h.bf16 %v2793_v43 }
 0x48f   : > { %v1105_v56 = vmul.f32 1.442695, %v1103_v54  ;;  %v1839_v54 = vsel %vm489_vm0, %v3817_v55, -inf }
 0x491   : > { %2907 = vpow2.f32 %v1105_v56 }
 0x492   : > { %1651 = vmax.xlane.f32.xlu2 %v1650_v34 }
 0x494   : > { %v1102_v57 = vpop.xlane.xlu2 %1101 }
 0x495   : > { %v1104_v40 = vsub.f32 %v3729_v61, %v1102_v57  ;;  %v3829_v61 = vpop.f32.mrf.mxu2 }
 0x496   : > { %v1842_v20 = vsel %vm489_vm0, %v3829_v61, -inf }
 0x497   : > { %v3820_v11 = vpop.eup %2907  ;;  %v1107_v59 = vmul.f32 1.442695, %v1104_v40 }
 0x498   : > { %2522 = vmatmul.msk.f32.vlgmr.msrb.gmra.mxu1 %vm489_vm0, %v3820_v11 }
 0x499   : > { %2909 = vpow2.f32 %v1107_v59  ;;  %1595 = vmatpush.msrb.mxu1 %v2794_v58  ;;  %v725_v59 = vsel %vm489_vm0, %v3448_v1, 0.0 }
 0x49a   : > { %921 = vadd.xlane.f32.xlu2 %v920_v13 }
 0x49b   : > { %1596 = vmatpush.msrb.mxu1 %v2795_v60 }
 0x49c   : > { %v1365_v0 = vpop.xlane.xlu0 %1364 }
 0x49d   : > { %v1369_v26 = vsub.f32 %v3733_v63, %v1365_v0  ;;  %2812 = vrot.lane.b32.xlu0 %v3625_v21, %s3189_s8  ;;  %v3866_v0 = vpop.f32.mrf.mxu2 }
 0x49e   : > { %v2031_v1 = vsel %vm489_vm0, %v3866_v0, -inf }
 0x49f   : > { %v2910_v4 = vpop.eup %2909  ;;  %v1371_v8 = vmul.f32 1.442695, %v1369_v26 }
 0x4a0   : > { %2523 = vmatmul.msk.f32.gmra.mxu1 %vm489_vm0, %v2910_v4  ;;  %v1112_v19 = vsel %vm489_vm0, %v2910_v4, 0.0 }
 0x4a1   : > { %2911 = vpow2.f32 %v1371_v8  ;;  %1113 = vadd.xlane.f32.xlu1 %v1112_v19  ;;  %v2784_v19 = vunpack.i.l.bf16 %v3800_v46 }
 0x4a2   : > { %1843 = vmax.xlane.f32.xlu2 %v1842_v20  ;;  %v2785_v20 = vunpack.i.h.bf16 %v3800_v46 }
 0x4a4   : > { %v1368_v63 = vpop.xlane.xlu2 %1367 }
 0x4a5   : > { %v1370_v35 = vsub.f32 %v3737_v28, %v1368_v63  ;;  %v3877_v63 = vpop.f32.mrf.mxu2 }
 0x4a7   : > { %v3838_v21 = vpop.eup %2911  ;;  %v1373_v10 = vmul.f32 1.442695, %v1370_v35 }
 0x4a8   : > { %2534 = vmatmul.msk.f32.vlgmr.msra.gmra.mxu1 %vm489_vm0, %v3838_v21 }
 0x4a9   : > { %2913 = vpow2.f32 %v1373_v10  ;;  %1787 = vmatpush.msra.mxu1 %v2804_v38 }
 0x4ab   : > { %1788 = vmatpush.msra.mxu1 %v2805_v17  ;;  %v2034_v17 = vsel %vm489_vm0, %v3877_v63, -inf }
 0x4ac   : > { %v1553_v12 = vpop.xlane.xlu1 %1552 }
 0x4ad   : > { %v1557_v22 = vsub.f32 %v3743_v3, %v1553_v12 }
 0x4af   : > { %v3843_v24 = vpop.eup %2913  ;;  %v1559_v32 = vmul.f32 1.442695, %v1557_v22 }
 0x4b0   : > { %2535 = vmatmul.msk.f32.gmra.mxu1 %vm489_vm0, %v3843_v24 }
 0x4b1   : > { %2915 = vpow2.f32 %v1559_v32  ;;  %v3890_v32 = vpop.f32.mrf.mxu3 }
 0x4b4   : > { %v1556_v28 = vpop.xlane.xlu2 %1555 }
 0x4b5   : > { %v1558_v36 = vsub.f32 %v3749_v7, %v1556_v28 }
 0x4b7   : > { %v3848_v41 = vpop.eup %2915  ;;  %v1561_v5 = vmul.f32 1.442695, %v1558_v36 }
 0x4b8   : > { %2546 = vmatmul.msk.f32.vlgmr.msrb.gmra.mxu1 %vm489_vm0, %v3848_v41 }
 0x4b9   : > { %2917 = vpow2.f32 %v1561_v5 }
 0x4bc   : > { %v1745_v43 = vpop.xlane.xlu1 %1744  ;;  %v1006_v40 = vpop.xlane.xlu2 %1005 }
 0x4bd   : > { %v1749_v3 = vsub.f32 %v3755_v45, %v1745_v43  ;;  %v1008_v13 = vsub.f32 %v3753_v44, %v1006_v40  ;;  %v1109_v43 = vsel %vm489_vm0, %v3820_v11, 0.0 }
 0x4bf   : > { %v2918_v47 = vpop.eup %2917  ;;  %v1751_v49 = vmul.f32 1.442695, %v1749_v3  ;;  %v1011_v26 = vmul.f32 1.442695, %v1008_v13 }
 0x4c0   : > { %2547 = vmatmul.msk.f32.gmra.mxu1 %vm489_vm0, %v2918_v47  ;;  %v1566_v52 = vsel %vm489_vm0, %v2918_v47, 0.0  ;;  %v2789_v47 = vunpack.i.l.bf16 %v3815_v50 }
 0x4c1   : > { %2919 = vpow2.f32 %v1751_v49  ;;  %1567 = vadd.xlane.f32.xlu1 %v1566_v52  ;;  %v667_v52 = vpop.f32.mrf.mxu3 }
 0x4c4   : > { %v1748_v33 = vpop.xlane.xlu0 %1747 }
 0x4c5   : > { %v1750_v7 = vsub.f32 %v3761_v14, %v1748_v33  ;;  %v2790_v33 = vunpack.i.h.bf16 %v3815_v50 }
 0x4c7   : > { %v2920_v56 = vpop.eup %2919  ;;  %v1753_v34 = vmul.f32 1.442695, %v1750_v7  ;;  %1840 = vmax.xlane.f32.xlu0 %v1839_v54  ;;  %v1563_v54 = vsel %vm489_vm0, %v3848_v41, 0.0 }
 0x4c8   : > { %2558 = vmatmul.msk.f32.vlgmr.msra.gmra.mxu1 %vm489_vm0, %v2920_v56  ;;  %v1755_v45 = vsel %vm489_vm0, %v2920_v56, 0.0 }
 0x4c9   : > { %2921 = vpow2.f32 %v1753_v34  ;;  %1756 = vadd.xlane.f32.xlu1 %v1755_v45  ;;  %v856_v50 = vpop.f32.mrf.mxu3 }
 0x4cc   : > { %v1003_v57 = vpop.xlane.xlu0 %1002 }
 0x4cd   : > { %v1007_v58 = vsub.f32 %v3747_v6, %v1003_v57 }
 0x4cf   : > { %v2922_v14 = vpop.eup %2921  ;;  %v1009_v60 = vmul.f32 1.442695, %v1007_v58  ;;  %726 = vadd.xlane.f32.xlu0 %v725_v59  ;;  %v2808_v58 = vpop.permute.xlu2 %2807 }
 0x4d0   : > { %2559 = vmatmul.msk.f32.gmra.mxu1 %vm489_vm0, %v2922_v14  ;;  %v1758_v62 = vsel %vm489_vm0, %v2922_v14, 0.0  ;;  %v2799_v14 = vunpack.i.l.bf16 %v3811_v48 }
 0x4d1   : > { %2923 = vpow2.f32 %v1009_v60  ;;  %1759 = vadd.xlane.f32.xlu2 %v1758_v62  ;;  %v2800_v62 = vunpack.i.h.bf16 %v3811_v48 }
 0x4d2   : > { %2925 = vpow2.f32 %v1011_v26 }
 0x4d4   : > { %v1937_v4 = vpop.xlane.xlu1 %1936 }
 0x4d5   : > { %v1941_v6 = vsub.f32 %v3769_v42, %v1937_v4  ;;  %v859_v4 = vpop.f32.mrf.mxu3 }
 0x4d7   : > { %v3871_v8 = vpop.eup %2923  ;;  %v1943_v44 = vmul.f32 1.442695, %v1941_v6  ;;  %2032 = vmax.xlane.f32.xlu0 %v2031_v1 }
 0x4d8   : > { %2516 = vmatmul.msk.f32.vlgmr.msrb.gmra.mxu3 %vm489_vm0, %v3871_v8  ;;  %v3880_v10 = vpop.eup %2925 }
 0x4d9   : > { %2927 = vpow2.f32 %v1943_v44  ;;  %1499 = vmatpush.msrb.mxu3 %v2784_v19 }
 0x4db   : > { %1500 = vmatpush.msrb.mxu3 %v2785_v20 }
 0x4dc   : > { %v1195_v42 = vpop.xlane.xlu1 %1194  ;;  %v1940_v35 = vpop.xlane.xlu0 %1939 }
 0x4dd   : > { %v1199_v38 = vsub.f32 %v3765_v37, %v1195_v42  ;;  %v1942_v36 = vsub.f32 %v3777_v27, %v1940_v35 }
 0x4df   : > { %v3884_v12 = vpop.eup %2927  ;;  %v1201_v22 = vmul.f32 1.442695, %v1199_v38  ;;  %2035 = vmax.xlane.f32.xlu0 %v2034_v17  ;;  %v1945_v7 = vmul.f32 1.442695, %v1942_v36 }
 0x4e0   : > { %2517 = vmatmul.msk.f32.gmra.mxu3 %vm489_vm0, %v3880_v10  ;;  %v1947_v46 = vsel %vm489_vm0, %v3884_v12, 0.0 }
 0x4e1   : > { %2929 = vpow2.f32 %v1201_v22  ;;  %1948 = vadd.xlane.f32.xlu2 %v1947_v46 }
 0x4e4   : > { %v3892_v37 = vpop.xlane.xlu1 %729  ;;  %v1198_v28 = vpop.xlane.xlu0 %1197 }
 0x4e5   : > { %v1200_v5 = vsub.f32 %v3775_v15, %v1198_v28 }
 0x4e7   : > { %v3898_v3 = vpop.eup %2929  ;;  %v1203_v49 = vmul.f32 1.442695, %v1200_v5  ;;  %1110 = vadd.xlane.f32.xlu0 %v1109_v43  ;;  %v2810_v5 = vunpack.i.h.bf16 %v2808_v58 }
 0x4e8   : > { %2528 = vmatmul.msk.f32.vlgmr.msra.gmra.mxu3 %vm489_vm0, %v3898_v3 }
 0x4e9   : > { %2931 = vpow2.f32 %v1203_v49  ;;  %1691 = vmatpush.msra.mxu3 %v2789_v47 }
 0x4ea   : > { %2933 = vpow2.f32 %v1945_v7 }
 0x4eb   : > { %1692 = vmatpush.msra.mxu3 %v2790_v33 }
 0x4ec   : > { %v823_v15 = vpop.xlane.xlu1 %822  ;;  %v1455_v27 = vpop.xlane.xlu0 %1454 }
 0x4ed   : > { %v1459_v11 = vsub.f32 %v3783_v18, %v1455_v27  ;;  %v952_v27 = vpop.f32.mrf.mxu1 }
 0x4ef   : > { %v3907_v56 = vpop.eup %2931  ;;  %v1461_v34 = vmul.f32 1.442695, %v1459_v11  ;;  %1564 = vadd.xlane.f32.xlu0 %v1563_v54 }
 0x4f0   : > { %2529 = vmatmul.msk.f32.gmra.mxu3 %vm489_vm0, %v3907_v56  ;;  %v3911_v45 = vpop.eup %2933 }
 0x4f1   : > { %2935 = vpow2.f32 %v1461_v34  ;;  %v1950_v41 = vsel %vm489_vm0, %v3911_v45, 0.0 }
 0x4f2   : > { %2937 = vrcp.f32 %v823_v15 }
 0x4f4   : > { %v826_v57 = vpop.xlane.xlu1 %825  ;;  %v1458_v40 = vpop.xlane.xlu0 %1457 }
 0x4f5   : > { %2939 = vrcp.f32 %v826_v57  ;;  %v1460_v18 = vsub.f32 %v3789_v30, %v1458_v40  ;;  %v1205_v40 = vsel %vm489_vm0, %v3898_v3, 0.0  ;;  %v1208_v3 = vsel %vm489_vm0, %v3907_v56, 0.0 }
 0x4f7   : > { %v3916_v59 = vpop.eup %2935  ;;  %v1463_v60 = vmul.f32 1.442695, %v1460_v18  ;;  %1951 = vadd.xlane.f32.xlu0 %v1950_v41 }
 0x4f8   : > { %2540 = vmatmul.msk.f32.vlgmr.msrb.gmra.mxu3 %vm489_vm0, %v3916_v59  ;;  %v2938_v13 = vpop.eup %2937 }
 0x4f9   : > { %2941 = vpow2.f32 %v1463_v60  ;;  %1883 = vmatpush.msrb.mxu3 %v2799_v14  ;;  %v864_v6 = vmul.f32 %v2938_v13, %v856_v50  ;;  %v1016_v50 = vsel %vm489_vm0, %v3880_v10, 0.0 }
 0x4fa   : > { %2943 = vrcp.f32 %v3835_v23  ;;  %v2809_v23 = vunpack.i.l.bf16 %v2808_v58 }
 0x4fb   : > { %v2940_v26 = vpop.eup %2939  ;;  %1884 = vmatpush.msrb.mxu3 %v2800_v62 }
 0x4fc   : > { %v1649_v30 = vpop.xlane.xlu0 %1648  ;;  %v865_v1 = vmul.f32 %v2940_v26, %v859_v4  ;;  %v919_v43 = vpop.xlane.xlu1 %918 }
 0x4fd   : > { %v1653_v19 = vsub.f32 %v3795_v39, %v1649_v30  ;;  %v632_v44 = vpop.xlane.xlu2 %631 }
 0x4fe   : > { %2945 = vrcp.f32 %v632_v44  ;;  %v2826_v20 = vpack.i.bf16 %v865_v1, %v864_v6 }
 0x4ff   : > { %v2942_v42 = vpop.eup %2941  ;;  %v1655_v35 = vmul.f32 1.442695, %v1653_v19 }
 0x500   : > { %2827 = vrot.lane.b32.xlu2 %v2826_v20, %s3187_s6  ;;  %2541 = vmatmul.msk.f32.gmra.mxu3 %vm489_vm0, %v2942_v42  ;;  %v2944_v48 = vpop.eup %2943 }
 0x501   : > { %2947 = vpow2.f32 %v1655_v35  ;;  %v672_v39 = vmul.f32 %v2944_v48, %v3890_v32 }
 0x504   : > { %v2946_v38 = vpop.eup %2945 }
 0x505   : > { %v1652_v17 = vpop.xlane.xlu2 %1651  ;;  %v673_v22 = vmul.f32 %v2946_v38, %v667_v52 }
 0x506   : > { %v1654_v46 = vsub.f32 %v3808_v53, %v1652_v17 }
 0x507   : > { %v2948_v28 = vpop.eup %2947  ;;  %v2816_v47 = vpack.i.bf16 %v673_v22, %v672_v39 }
 0x508   : > { %v1657_v36 = vmul.f32 1.442695, %v1654_v46  ;;  %2552 = vmatmul.msk.f32.vlgmr.msra.gmra.mxu3 %vm489_vm0, %v2948_v28  ;;  %v1659_v10 = vsel %vm489_vm0, %v2948_v28, 0.0 }
 0x509   : > { %2075 = vmatpush.msra.mxu3 %v2809_v23 }
 0x50a   : > { %2949 = vpow2.f32 %v1657_v36 }
 0x50b   : > { %2076 = vmatpush.msra.mxu3 %v2810_v5  ;;  %2817 = vrot.lane.b32.xlu0 %v2816_v47, %s3188_s7  ;;  %2951 = vrcp.f32 %v919_v43 }
 0x50d   : > { %v922_v49 = vpop.xlane.xlu2 %921 }
 0x50e   : > { %2953 = vrcp.f32 %v922_v49 }
 0x50f   : > { %v2813_v52 = vpop.permute.xlu0 %2812 }
 0x510   : > { %v2950_v53 = vpop.eup %2949  ;;  %v2814_v33 = vunpack.i.l.bf16 %v2813_v52  ;;  %v2815_v7 = vunpack.i.h.bf16 %v2813_v52 }
 0x511   : > { %2553 = vmatmul.msk.f32.gmra.mxu3 %vm489_vm0, %v2950_v53  ;;  %v2952_v32 = vpop.eup %2951  ;;  %v1662_v30 = vsel %vm489_vm0, %v2950_v53, 0.0 }
 0x512   : > { %1979 = vmatpush.msrb.mxu1 %v2814_v33  ;;  %v960_v11 = vmul.f32 %v2952_v32, %v952_v27 }
 0x514   : > { %v2954_v15 = vpop.eup %2953  ;;  %1980 = vmatpush.msrb.mxu1 %v2815_v7  ;;  %v1114_v48 = vpop.xlane.xlu1 %1113 }
 0x515   : > { %2570 = vmatmul.msk.f32.vlgmr.msrb.gmra.mxu1 %vm489_vm0, %v3884_v12  ;;  %v961_v54 = vmul.f32 %v2954_v15, %v3741_v2  ;;  %v1144_v57 = vpop.f32.mrf.mxu1  ;;  %v1468_v12 = vsel %vm489_vm0, %v2942_v42, 0.0  ;;  %v1844_v41 = vpop.xlane.xlu2 %1843 }
 0x517   : > { %v2831_v34 = vpack.i.bf16 %v961_v54, %v960_v11 }
 0x519   : > { %2832 = vrot.lane.b32.xlu0 %v2831_v34, %s3184_s26  ;;  %v1013_v34 = vsel %vm489_vm0, %v3871_v8, 0.0  ;;  %v1465_v8 = vsel %vm489_vm0, %v3916_v59, 0.0 }
 0x51d   : > { %2571 = vmatmul.msk.f32.gmra.mxu1 %vm489_vm0, %v3911_v45  ;;  %v1147_v58 = vpop.f32.mrf.mxu1  ;;  %v1846_v45 = vsub.f32 %v3829_v61, %v1844_v41 }
 0x51f   : > { %v1849_v13 = vmul.f32 1.442695, %v1846_v45 }
 0x525   : > { %v3948_v62 = vpop.f32.mrf.mxu1 }
 0x529   : > { %1017 = vadd.xlane.f32.xlu2 %v1016_v50 }
 0x52d   : > { %v3957_v20 = vpop.f32.mrf.mxu1 }
 0x531   : > { %1206 = vadd.xlane.f32.xlu2 %v1205_v40 }
 0x534   : > { %v1568_v47 = vpop.xlane.xlu1 %1567 }
 0x535   : > { %v1598_v38 = vpop.f32.mrf.mxu1 }
 0x539   : > { %1469 = vadd.xlane.f32.xlu2 %v1468_v12 }
 0x53a   : > { %v1841_v2 = vpop.xlane.xlu0 %1840 }
 0x53b   : > { %v1845_v18 = vsub.f32 %v3817_v55, %v1841_v2 }
 0x53c   : > { %v1757_v33 = vpop.xlane.xlu1 %1756 }
 0x53d   : > { %v1847_v14 = vmul.f32 1.442695, %v1845_v18  ;;  %v1601_v39 = vpop.f32.mrf.mxu1 }
 0x53f   : > { %2955 = vpow2.f32 %v1847_v14 }
 0x540   : > { %2957 = vrcp.f32 %v3892_v37 }
 0x541   : > { %1660 = vadd.xlane.f32.xlu2 %v1659_v10 }
 0x542   : > { %v727_v60 = vpop.xlane.xlu0 %726 }
 0x543   : > { %2959 = vrcp.f32 %v727_v60  ;;  %1209 = vadd.xlane.f32.xlu0 %v1208_v3 }
 0x544   : > { %2961 = vpow2.f32 %v1849_v13  ;;  %v1760_v53 = vpop.xlane.xlu2 %1759 }
 0x545   : > { %v2956_v55 = vpop.eup %2955  ;;  %v1790_v49 = vpop.f32.mrf.mxu1 }
 0x546   : > { %2564 = vmatmul.msk.f32.vlgmr.msrb.gmra.mxu3 %vm489_vm0, %v2956_v55  ;;  %v2958_v26 = vpop.eup %2957 }
 0x547   : > { %v769_v6 = vmul.f32 %v2958_v26, %v3544_v31 }
 0x549   : > { %v2960_v61 = vpop.eup %2959 }
 0x54a   : > { %v2033_v4 = vpop.xlane.xlu0 %2032  ;;  %v768_v37 = vmul.f32 %v2960_v61, %v3540_v29  ;;  %v3955_v19 = vpop.eup %2961  ;;  %v1851_v29 = vsel %vm489_vm0, %v2956_v55, 0.0 }
 0x54b   : > { %v2037_v56 = vsub.f32 %v3866_v0, %v2033_v4  ;;  %1663 = vadd.xlane.f32.xlu0 %v1662_v30  ;;  %v1854_v3 = vsel %vm489_vm0, %v3955_v19, 0.0 }
 0x54c   : > { %v2821_v1 = vpack.i.bf16 %v769_v6, %v768_v37 }
 0x54d   : > { %v2039_v44 = vmul.f32 1.442695, %v2037_v56  ;;  %v1793_v54 = vpop.f32.mrf.mxu1 }
 0x54e   : > { %2822 = vrot.lane.b32.xlu1 %v2821_v1, %s3189_s8  ;;  %2565 = vmatmul.msk.f32.gmra.mxu3 %vm489_vm0, %v3955_v19 }
 0x54f   : > { %2963 = vpow2.f32 %v2039_v44 }
 0x552   : > { %v2036_v42 = vpop.xlane.xlu0 %2035 }
 0x553   : > { %v2038_v31 = vsub.f32 %v3877_v63, %v2036_v42  ;;  %1852 = vadd.xlane.f32.xlu0 %v1851_v29 }
 0x554   : > { %v1949_v13 = vpop.xlane.xlu2 %1948 }
 0x555   : > { %v2964_v0 = vpop.eup %2963  ;;  %v2041_v35 = vmul.f32 1.442695, %v2038_v31 }
 0x556   : > { %2576 = vmatmul.msk.f32.vlgmr.msra.gmra.mxu3 %vm489_vm0, %v2964_v0 }
 0x557   : > { %2965 = vpow2.f32 %v2041_v35 }
 0x558   : > { %2967 = vrcp.f32 %v1114_v48 }
 0x55a   : > { %v1111_v17 = vpop.xlane.xlu0 %1110 }
 0x55b   : > { %2969 = vrcp.f32 %v1111_v17  ;;  %v1048_v6 = vpop.f32.mrf.mxu3 }
 0x55c   : > { %v2828_v56 = vpop.permute.xlu2 %2827 }
 0x55d   : > { %v2966_v22 = vpop.eup %2965 }
 0x55e   : > { %2577 = vmatmul.msk.f32.gmra.mxu3 %vm489_vm0, %v2966_v22  ;;  %v2046_v46 = vsel %vm489_vm0, %v2966_v22, 0.0  ;;  %v2968_v28 = vpop.eup %2967 }
 0x55f   : > { %2047 = vadd.xlane.f32.xlu2 %v2046_v46  ;;  %v1153_v63 = vmul.f32 %v2968_v28, %v1147_v58 }
 0x561   : > { %v2970_v23 = vpop.eup %2969 }
 0x562   : > { %v1152_v36 = vmul.f32 %v2970_v23, %v1144_v57  ;;  %v1565_v43 = vpop.xlane.xlu0 %1564  ;;  %v2830_v23 = vunpack.i.h.bf16 %v2828_v56 }
 0x563   : > { %2971 = vrcp.f32 %v1565_v43  ;;  %v1051_v19 = vpop.f32.mrf.mxu3 }
 0x564   : > { %v2836_v5 = vpack.i.bf16 %v1153_v63, %v1152_v36  ;;  %2973 = vrcp.f32 %v1568_v47  ;;  %v2829_v63 = vunpack.i.l.bf16 %v2828_v56 }
 0x565   : > { %2975 = vrcp.f32 %v1760_v53 }
 0x566   : > { %2977 = vrcp.f32 %v1757_v33 }
 0x567   : > { %2837 = vrot.lane.b32.xlu0 %v2836_v5, %s3183_s21  ;;  %2979 = vrcp.f32 %v3528_v25 }
 0x568   : > { %2981 = vrcp.f32 %v3576_v51 }
 0x569   : > { %v2972_v52 = vpop.eup %2971  ;;  %2983 = vrcp.f32 %v1949_v13 }
 0x56a   : > { %v1606_v32 = vmul.f32 %v2972_v52, %v1598_v38  ;;  %v2974_v7 = vpop.eup %2973  ;;  %v1952_v27 = vpop.xlane.xlu0 %1951 }
 0x56b   : > { %v1607_v15 = vmul.f32 %v2974_v7, %v1601_v39  ;;  %v2976_v50 = vpop.eup %2975  ;;  %2985 = vrcp.f32 %v1952_v27  ;;  %v1240_v42 = vpop.f32.mrf.mxu3 }
 0x56c   : > { %v1799_v57 = vmul.f32 %v2976_v50, %v1793_v54  ;;  %v2978_v40 = vpop.eup %2977 }
 0x56d   : > { %v2846_v11 = vpack.i.bf16 %v1607_v15, %v1606_v32  ;;  %v2980_v12 = vpop.eup %2979  ;;  %v1798_v58 = vmul.f32 %v2978_v40, %v1790_v49 }
 0x56e   : > { %v2982_v2 = vpop.eup %2981  ;;  %v574_v14 = vmul.f32 %v2980_v12, %v3462_v9  ;;  %v1378_v9 = vsel %vm489_vm0, %v3843_v24, 0.0 }
 0x56f   : > { %v2851_v18 = vpack.i.bf16 %v1799_v57, %v1798_v58  ;;  %v575_v25 = vmul.f32 %v2982_v2, %v3473_v16  ;;  %v2043_v16 = vsel %vm489_vm0, %v2964_v0, 0.0  ;;  %v2984_v59 = vpop.eup %2983 }
 0x571   : > { %v2986_v26 = vpop.eup %2985 }
 0x573   : > { %v1243_v35 = vpop.f32.mrf.mxu3 }
 0x577   : > { %2847 = vrot.lane.b32.xlu2 %v2846_v11, %s3189_s8 }
 0x578   : > { %1014 = vadd.xlane.f32.xlu1 %v1013_v34 }
 0x57b   : > { %v1502_v33 = vpop.f32.mrf.mxu3 }
 0x57d   : > { %v2818_v41 = vpop.permute.xlu0 %2817 }
 0x57e   : > { %v2820_v45 = vunpack.i.h.bf16 %v2818_v41  ;;  %v2819_v51 = vunpack.i.l.bf16 %v2818_v41 }
 0x57f   : > { %2852 = vrot.lane.b32.xlu2 %v2851_v18, %s3184_s26 }
 0x580   : > { %v1307_v10 = vsel %vm489_vm0, %v575_v25, %v2820_v45  ;;  %v1306_v60 = vsel %vm489_vm0, %v574_v14, %v2819_v51  ;;  %1466 = vadd.xlane.f32.xlu1 %v1465_v8 }
 0x583   : > { %v1505_v32 = vpop.f32.mrf.mxu3 }
 0x588   : > { %1855 = vadd.xlane.f32.xlu1 %v1854_v3 }
 0x58b   : > { %v2833_v44 = vpop.permute.xlu0 %2832  ;;  %v1694_v7 = vpop.f32.mrf.mxu3 }
 0x58c   : > { %v2835_v39 = vunpack.i.h.bf16 %v2833_v44  ;;  %v2834_v36 = vunpack.i.l.bf16 %v2833_v44 }
 0x590   : > { %2044 = vadd.xlane.f32.xlu1 %v2043_v16 }
 0x591   : > { %1379 = vadd.xlane.f32.xlu0 %v1378_v9 }
 0x592   : > { %v1982_v55 = vpop.f32.mrf.mxu1 }
 0x593   : > { %v3985_v4 = vmul.f32 %v2984_v59, %v1982_v55 }
 0x594   : > { %v1697_v15 = vpop.f32.mrf.mxu3 }
 0x59a   : > { %v1985_v61 = vpop.f32.mrf.mxu1 }
 0x59b   : > { %v3987_v30 = vmul.f32 %v2986_v26, %v1985_v61 }
 0x59c   : > { %v1018_v1 = vpop.xlane.xlu2 %1017 }
 0x59d   : > { %v2876_v37 = vpack.i.bf16 %v3987_v30, %v3985_v4 }
 0x5a4   : > { %v1207_v24 = vpop.xlane.xlu2 %1206 }
 0x5a5   : > { %2987 = vrcp.f32 %v1207_v24 }
 0x5ab   : > { %v2988_v31 = vpop.eup %2987 }
 0x5ac   : > { %v1248_v48 = vmul.f32 %v2988_v31, %v1240_v42  ;;  %v1470_v11 = vpop.xlane.xlu2 %1469 }
 0x5b4   : > { %v1661_v18 = vpop.xlane.xlu2 %1660 }
 0x5b6   : > { %v1210_v29 = vpop.xlane.xlu0 %1209 }
 0x5b7   : > { %2989 = vrcp.f32 %v1210_v29 }
 0x5b8   : > { %2991 = vrcp.f32 %v1018_v1 }
 0x5bd   : > { %v2990_v0 = vpop.eup %2989 }
 0x5be   : > { %v1249_v38 = vmul.f32 %v2990_v0, %v1243_v35  ;;  %v2992_v54 = vpop.eup %2991  ;;  %v1664_v58 = vpop.xlane.xlu0 %1663 }
 0x5bf   : > { %v1057_v12 = vmul.f32 %v2992_v54, %v1051_v19 }
 0x5c0   : > { %v2823_v17 = vpop.permute.xlu1 %2822  ;;  %v2856_v22 = vpack.i.bf16 %v1249_v38, %v1248_v48  ;;  %v2651_v48 = vld [vmem:[#allocation7 + $0x38] sm:$0xff]  ;;  %v2650_v38 = vld [vmem:[#allocation7 + $0x30] sm:$0xff] }
 0x5c1   : > { %v2825_v46 = vunpack.i.h.bf16 %v2823_v17  ;;  %v2824_v28 = vunpack.i.l.bf16 %v2823_v17  ;;  %2228 = vmatpush.bf16.msra.mxu0 %v2651_v48  ;;  %v1375_v17 = vsel %vm489_vm0, %v3838_v21, 0.0  ;;  %v2644_v21 = vld [vmem:[#allocation7] sm:$0xff] }
 0x5c2   : > { %2857 = vrot.lane.b32.xlu2 %v2856_v22, %s3185_s10  ;;  %v2649_v22 = vld [vmem:[#allocation7 + $0x28] sm:$0xff] }
 0x5c3   : > { %v1309_v5 = vsel %vm1308_vm1, %v1306_v60, %v2824_v28  ;;  %v1310_v43 = vsel %vm1308_vm1, %v1307_v10, %v2825_v46  ;;  %v2648_v46 = vld [vmem:[#allocation7 + $0x20] sm:$0xff] }
 0x5c4   : > { %v1312_v47 = vsel %vm1311_vm2, %v1309_v5, %v2829_v63  ;;  %v1313_v49 = vsel %vm1311_vm2, %v1310_v43, %v2830_v23  ;;  %v2647_v23 = vld [vmem:[#allocation7 + $0x18] sm:$0xff]  ;;  %v2646_v63 = vld [vmem:[#allocation7 + $0x10] sm:$0xff] }
 0x5c5   : > { %v3997_v52 = vsel %vm1314_vm3, %v1312_v47, %v2834_v36  ;;  %v4000_v53 = vsel %vm1314_vm3, %v1313_v49, %v2835_v39  ;;  %2229 = vmatpush.bf16.msra.mxu0 %v2650_v38  ;;  %v2645_v36 = vld [vmem:[#allocation7 + $0x8] sm:$0xff] }
 0x5c6   : > { %v1853_v3 = vpop.xlane.xlu0 %1852 }
 0x5c9   : > { %v1886_v50 = vpop.f32.mrf.mxu3  ;;  %2230 = vmatpush.bf16.msra.mxu0 %v2649_v22 }
 0x5cd   : > { %2231 = vmatpush.bf16.msra.mxu0 %v2648_v46  ;;  %v2886_v46 = vld [vmem:[%s4079_s3] ss:$0 sm:$0xff] }
 0x5d1   : > { %v1889_v8 = vpop.f32.mrf.mxu3  ;;  %2232 = vmatpush.bf16.msra.mxu0 %v2647_v23 }
 0x5d2   : > { %v2048_v56 = vpop.xlane.xlu2 %2047 }
 0x5d5   : > { %2233 = vmatpush.bf16.msra.mxu0 %v2646_v63 }
 0x5d9   : > { %v2078_v61 = vpop.f32.mrf.mxu3  ;;  %v2838_v5 = vpop.permute.xlu0 %2837  ;;  %2234 = vmatpush.bf16.msra.mxu0 %v2645_v36 }
 0x5da   : > { %v2848_v28 = vpop.permute.xlu2 %2847 }
 0x5dd   : > { %2235 = vmatpush.bf16.msra.mxu0 %v2644_v21 }
 0x5e1   : > { %v2081_v42 = vpop.f32.mrf.mxu3 }
 0x5e2   : > { %v2853_v39 = vpop.permute.xlu2 %2852 }
 0x5eb   : > { %v1015_v27 = vpop.xlane.xlu1 %1014 }
 0x5ec   : > { %2993 = vrcp.f32 %v1015_v27  ;;  %v2855_v27 = vunpack.i.h.bf16 %v2853_v39 }
 0x5ed   : > { %2995 = vrcp.f32 %v1470_v11 }
 0x5f2   : > { %v2994_v34 = vpop.eup %2993 }
 0x5f3   : > { %v1467_v57 = vpop.xlane.xlu1 %1466  ;;  %v1056_v40 = vmul.f32 %v2994_v34, %v1048_v6  ;;  %v2996_v41 = vpop.eup %2995 }
 0x5f4   : > { %2997 = vrcp.f32 %v1467_v57  ;;  %v1511_v14 = vmul.f32 %v2996_v41, %v1505_v32  ;;  %v2850_v32 = vunpack.i.h.bf16 %v2848_v28 }
 0x5f5   : > { %v2841_v2 = vpack.i.bf16 %v1057_v12, %v1056_v40  ;;  %2999 = vrcp.f32 %v1664_v58 }
 0x5f6   : > { %3001 = vrcp.f32 %v1661_v18 }
 0x5f7   : > { %2842 = vrot.lane.b32.xlu1 %v2841_v2, %s3186_s11  ;;  %v2839_v2 = vunpack.i.l.bf16 %v2838_v5 }
 0x5fa   : > { %v2998_v25 = vpop.eup %2997 }
 0x5fb   : > { %v1510_v45 = vmul.f32 %v2998_v25, %v1502_v33  ;;  %v1856_v51 = vpop.xlane.xlu1 %1855  ;;  %v3000_v60 = vpop.eup %2999 }
 0x5fc   : > { %v3002_v16 = vpop.eup %3001  ;;  %3003 = vrcp.f32 %v1856_v51  ;;  %v1703_v13 = vmul.f32 %v3000_v60, %v1697_v15 }
 0x5fd   : > { %v2861_v10 = vpack.i.bf16 %v1511_v14, %v1510_v45  ;;  %3005 = vrcp.f32 %v1853_v3  ;;  %v1702_v9 = vmul.f32 %v3002_v16, %v1694_v7 }
 0x5ff   : > { %2862 = vrot.lane.b32.xlu2 %v2861_v10, %s3188_s7  ;;  %v2866_v59 = vpack.i.bf16 %v1703_v13, %v1702_v9  ;;  %s3125_s7 = scalar_lea.hbm %s4080_s4, 64 }
 0x602   : > { %v3004_v26 = vpop.eup %3003 }
 0x603   : > { %v2045_v55 = vpop.xlane.xlu1 %2044  ;;  %v3006_v6 = vpop.eup %3005  ;;  %v1895_v1 = vmul.f32 %v3004_v26, %v1889_v8  ;;  %v2854_v26 = vunpack.i.l.bf16 %v2853_v39 }
 0x604   : > { %3007 = vrcp.f32 %v2045_v55  ;;  %v1894_v19 = vmul.f32 %v3006_v6, %v1886_v50  ;;  %v1380_v47 = vpop.xlane.xlu0 %1379  ;;  %v2849_v55 = vunpack.i.l.bf16 %v2848_v28 }
 0x605   : > { %3009 = vrcp.f32 %v2048_v56 }
 0x606   : > { %v2871_v44 = vpack.i.bf16 %v1895_v1, %v1894_v19  ;;  %3011 = vrcp.f32 %v1380_v47 }
 0x607   : > { %2867 = vrot.lane.b32.xlu2 %v2866_v59, %s3187_s6 }
 0x60a   : > { %v3008_v24 = vpop.eup %3007 }
 0x60b   : > { %v2086_v29 = vmul.f32 %v3008_v24, %v2078_v61  ;;  %v3010_v31 = vpop.eup %3009 }
 0x60c   : > { %v2087_v0 = vmul.f32 %v3010_v31, %v2081_v42  ;;  %v3012_v4 = vpop.eup %3011 }
 0x60e   : > { %v2881_v35 = vpack.i.bf16 %v2087_v0, %v2086_v29 }
 0x60f   : > { %2872 = vrot.lane.b32.xlu2 %v2871_v44, %s3186_s11 }
 0x617   : > { %2882 = vrot.lane.b32.xlu2 %v2881_v35, %s3185_s10  ;;  %s2256_s10 = scalar_lea.sflag [#allocation4], %s3317_s24 }
 0x61c   : > { %v2858_v43 = vpop.permute.xlu2 %2857 }
 0x61d   : > { %v2860_v18 = vunpack.i.h.bf16 %v2858_v43  ;;  %v2859_v41 = vunpack.i.l.bf16 %v2858_v43 }
 0x621   : > { %1376 = vadd.xlane.f32.xlu1 %v1375_v17 }
 0x63a   : > { %2877 = vrot.lane.b32.xlu1 %v2876_v37, %s3183_s21  ;;  %v1413_v37 = vmul.f32 %v3012_v4, %v3957_v20  ;;  %v2840_v20 = vunpack.i.h.bf16 %v2838_v5  ;;  %s2271_s21 = sshll.u32 %s2268_s13, 4  ;;  %s2272_s21 = int_to_ptr.hbm [resolvable:$true] %s2271_s21 }
 0x63b   : > { %s3119_s11 = sshra.s32 %s2272_s21, 4  ;;  %s3120_s11 = int_to_ptr.hbm [resolvable:$true] %s3119_s11 }
 0x63c   : > { %s3121_s5 = scalar_lea.hbm %s3120_s11, 16  ;;  %p3126_p7 = scmp.lt.s32.totalorder %s3120_s11, %s4080_s4 }
 0x63d   : > { %p3122_p1 = scmp.ne.s32.totalorder %s3120_s11, %s3121_s5  ;;  %p3127_p2 = scmp.lt.s32.totalorder %s3125_s7, %s3121_s5 }
 0x63f   : > { %p3123_p4 = pnand %p3122_p1, %p3287_p3  ;;  %p3128_p9 = por %p3127_p2, %p3126_p7 }
 0x641   : > { %p3124_p8 = pneg %p3123_p4 }
 0x643   : > { %p3129_p10 = pnand %p3128_p9, %p3124_p8 }
 0x659   : > { %v2863_v49 = vpop.permute.xlu2 %2862 }
 0x65a   : > { %v2865_v30 = vunpack.i.h.bf16 %v2863_v49  ;;  %v2864_v9 = vunpack.i.l.bf16 %v2863_v49 }
 0x65c   : > { %v2145_v33 = vsel %vm489_vm0, %v1413_v37, %v2865_v30 }
 0x65d   : > { %v2147_v11 = vsel %vm1308_vm1, %v2145_v33, %v2850_v32 }
 0x661   : > { %v2868_v7 = vpop.permute.xlu2 %2867 }
 0x662   : > { %v2870_v15 = vunpack.i.h.bf16 %v2868_v7 }
 0x664   : > { %v2149_v54 = vsel %vm1311_vm2, %v2147_v11, %v2870_v15 }
 0x665   : > { %v2151_v34 = vsel %vm1314_vm3, %v2149_v54, %v2855_v27 }
 0x669   : > { %v2843_v50 = vpop.permute.xlu1 %2842  ;;  %v2873_v57 = vpop.permute.xlu2 %2872 }
 0x66a   : > { %v2845_v40 = vunpack.i.h.bf16 %v2843_v50  ;;  %v2844_v12 = vunpack.i.l.bf16 %v2843_v50  ;;  %v2875_v58 = vunpack.i.h.bf16 %v2873_v57  ;;  %v2874_v6 = vunpack.i.l.bf16 %v2873_v57 }
 0x66c   : > { %v1318_v25 = vsel %vm1317_vm4, %v3997_v52, %v2844_v12  ;;  %v1319_v14 = vsel %vm1317_vm4, %v4000_v53, %v2845_v40  ;;  %v2153_v45 = vsel %vm1317_vm4, %v2151_v34, %v2875_v58  ;;  %v2869_v53 = vunpack.i.l.bf16 %v2868_v7 }
 0x66d   : > { %v1321_v51 = vsel %vm1320_vm5, %v1318_v25, %v2839_v2  ;;  %v1322_v8 = vsel %vm1320_vm5, %v1319_v14, %v2840_v20 }
 0x66e   : > { %v1324_v10 = vsel %vm1323_vm6, %v1321_v51, %v2859_v41  ;;  %v1325_v60 = vsel %vm1323_vm6, %v1322_v8, %v2860_v18 }
 0x66f   : > { %v2158_v3 = vpack.c.bf16 %v1325_v60, %v1324_v10 }
 0x671   : > { %2236 = vmatmul.bf16.vlgmr.msra.gmra.mxu0 %v2158_v3  ;;  %v2883_v44 = vpop.permute.xlu2 %2882 }
 0x672   : > { %v2884_v31 = vunpack.i.l.bf16 %v2883_v44 }
 0x694   : > { %v1377_v16 = vpop.xlane.xlu1 %1376 }
 0x695   : > { %3013 = vrcp.f32 %v1377_v16 }
 0x69b   : > { %v3014_v13 = vpop.eup %3013 }
 0x69c   : > { %v1412_v52 = vmul.f32 %v3014_v13, %v3948_v62  ;;  %v2885_v62 = vunpack.i.h.bf16 %v2883_v44 }
 0x69e   : > { %v2144_v59 = vsel %vm489_vm0, %v1412_v52, %v2864_v9 }
 0x69f   : > { %v2146_v61 = vsel %vm1308_vm1, %v2144_v59, %v2849_v55 }
 0x6a0   : > { %v2148_v56 = vsel %vm1311_vm2, %v2146_v61, %v2869_v53 }
 0x6a1   : > { %v2150_v1 = vsel %vm1314_vm3, %v2148_v56, %v2854_v26 }
 0x6a2   : > { %v2152_v19 = vsel %vm1317_vm4, %v2150_v1, %v2874_v6 }
 0x6ac   : > { %v2878_v24 = vpop.permute.xlu1 %2877 }
 0x6ad   : > { %v2880_v42 = vunpack.i.h.bf16 %v2878_v24  ;;  %v2879_v29 = vunpack.i.l.bf16 %v2878_v24 }
 0x6af   : > { %v2154_v0 = vsel %vm1320_vm5, %v2152_v19, %v2879_v29  ;;  %v2155_v35 = vsel %vm1320_vm5, %v2153_v45, %v2880_v42 }
 0x6b0   : > { %v2156_v48 = vsel %vm1323_vm6, %v2154_v0, %v2884_v31  ;;  %v2157_v38 = vsel %vm1323_vm6, %v2155_v35, %v2885_v62 }
 0x6b1   : > { %v2159_v17 = vpack.c.bf16 %v2157_v38, %v2156_v48 }
 0x6b3   : > { %2241 = vmatmul.bf16.gmra.mxu0 %v2159_v17 }
 0x6ee   : > { %v2237_v22 = vpop.f32.mrf.mxu0 }
 0x6ef   : > { %v2238_v23 = vadd.f32 %v2886_v46, %v2237_v22 }
 0x6f6   : > { %v2239_v28 = vpop.f32.mrf.mxu0 }
 0x6f7   : > { %v2240_v63 = vadd.f32 %v2886_v46, %v2239_v28 }
 0x6f9   : > { %v2657_v39 = vpack.c.bf16 %v2240_v63, %v2238_v23 }
 0x6fb   : > { %2658 = vst [vmem:[%s251_s25] sm:$0xff] %v2657_v39  }
 0x730   : > { %v2242_v36 = vpop.f32.mrf.mxu0 }
 0x731   : > { %v2243_v21 = vadd.f32 %v2886_v46, %v2242_v36 }
 0x738   : > { %v2244_v5 = vpop.f32.mrf.mxu0 }
 0x739   : > { %v2245_v43 = vadd.f32 %v2886_v46, %v2244_v5 }
 0x73b   : > { %v2662_v47 = vpack.c.bf16 %v2245_v43, %v2243_v21 }
 0x73d   : > { %2664 = vst [vmem:[%s251_s25 + $0x8] sm:$0xff] %v2662_v47  }
 0x73e   : > { %3132 = shalt.err (!%p3129_p10)
}
 0x73f   : > { %s3190_s24 = smov 4  }
 0x740   : > { %2677 = dma.vmem_to_hbm [thread:$0]  (%p3287_p3), %s2270_s14, 256, %s2272_s21, %s2256_s10, %s3184_s26, %s3184_s26, %s3190_s24  }
 0x741 PF: > { %p2699_p11 = scmp.ge.s32.totalorder %s3175_s18, 2  ;;  %s2286_s27 = sand.u32 1, %s3163_s15  }
 0x742   : > { %s2287_s25 = scalar_lea.sflag [#allocation4], %s2286_s27 }
 0x743   : > { %p2691_p12 = pnand %p2699_p11, %p3251_p6 }
 0x745   : > { %p2692_p13 = pneg %p2691_p12 }
 0x747   : > { %3158 = dma.done.wait (%p2692_p13), %s2287_s25, 256  }
 0x748   : > { %3160 = vsyncadd (%p2692_p13), %s2287_s25, 4294967040  ;;  %p18_p0 = scmp.ge.s32.totalorder %s3274_s12, 6   ;;  %s4086_s15 = smov %s3167_s16 }
 0x749   : > { %s4087_s16 = smov %s3171_s17  ;;  %s4088_s17 = smov %s3283_s20 }
 0x74a   : > { %s4089_s18 = smov %s3274_s12  ;;  %20 = sbr.rel (!%p18_p0) target bundleno = 6 (0x6), region = 89 }
 0x74f   :  { %2293 = vsyncpa [#allocation3], 1 }
 0x750   :  { %2295 = vsyncpa [#allocation3 + $0x1], 1 }
 0x751   :  { %2296 = vsyncpa [#allocation6], 1 }
 0x752   :  { %2297 = vsyncpa [#allocation4], 1 }
 0x753   :  { %2299 = vsyncpa [#allocation4 + $0x1], 1 }

</bundles_post_ra>
